<compile_context>
chip_gen: v6e
topology: v6e:2x2x1
jax: 0.10.0
libtpu: 0.0.40
codegen_flags: <defaults>
</compile_context>

<pallas_src>
import functools

import jax
import jax.numpy as jnp
from jax.experimental import pallas as pl
from jax.experimental.pallas import tpu as pltpu


_VMEM_LIMIT_BYTES = 48 * 1024 * 1024  # explicit scoped-VMEM cap; safe on v5e/v6e/v7x


# ---------------------------------------------------------------------------
# Small static helpers.
# ---------------------------------------------------------------------------
def _round_up(n, m):
    return ((n + m - 1) // m) * m


def _largest_divisor(n, cap):
    cap = max(1, min(n, cap))
    for d in range(cap, 0, -1):
        if n % d == 0:
            return d
    return 1


def _pick_batch_block(b_pad, b_blk_max):
    # Largest multiple-of-8 divisor of b_pad that still leaves >=2 blocks when
    # possible (lets v7x split the batch across its two TensorCores).
    cap = min(b_blk_max, max(8, b_pad // 2))
    best = 8
    for d in range(8, b_pad + 1, 8):
        if b_pad % d == 0 and d <= cap:
            best = d
    return best


# ---------------------------------------------------------------------------
# Kernel 1: batched gate pre-compute  G = X @ Wih + b   (big MXU matmul).
# ---------------------------------------------------------------------------
def _gates_kernel(x_ref, w_ref, b_ref, g_ref):
    g = jnp.dot(x_ref[...], w_ref[...], preferred_element_type=jnp.float32)
    g_ref[...] = (g + b_ref[...]).astype(g_ref.dtype)


def gates_matmul(x2d, w_t, bias, *, m_blk_max=512):
    """x2d: (T*B, C) bf16; w_t: (C, 4H) bf16; bias: (1, 4H) f32 -> (T*B, 4H) bf16."""
    M, K = x2d.shape
    N = w_t.shape[1]
    m_blk = min(M, m_blk_max)
    grid = (pl.cdiv(M, m_blk),)
    return pl.pallas_call(
        _gates_kernel,
        out_shape=jax.ShapeDtypeStruct((M, N), jnp.bfloat16),
        grid_spec=pltpu.PrefetchScalarGridSpec(
            num_scalar_prefetch=0,
            grid=grid,
            in_specs=[
                pl.BlockSpec((m_blk, K), lambda m: (m, 0)),
                pl.BlockSpec((K, N), lambda m: (0, 0)),
                pl.BlockSpec((1, N), lambda m: (0, 0)),
            ],
            out_specs=pl.BlockSpec((m_blk, N), lambda m: (m, 0)),
        ),
        compiler_params=pltpu.CompilerParams(
            dimension_semantics=("parallel",),
            vmem_limit_bytes=_VMEM_LIMIT_BYTES),
    )(x2d, w_t, bias)


# ---------------------------------------------------------------------------
# Kernel 2: recurrent scan over time blocks (h @ Whh + precomputed gates).
# Gate columns are pre-permuted to [i, f, o, g] so one sigmoid covers (B, 3H).
# ---------------------------------------------------------------------------
def _lstm_recurrence(g_ref, whh_ref, h_sc, c_sc, seq_ref=None):
    """Run g_ref.shape[0] LSTM steps; h/c carried in f32; returns final h."""
    t_blk = g_ref.shape[0]
    H = h_sc.shape[-1]
    w = whh_ref[...]                                           # hoisted weight load

    def step(i, carry):
        h, c = carry
        g = g_ref[i].astype(jnp.float32) + jnp.dot(
            h.astype(w.dtype), w, preferred_element_type=jnp.float32)   # (B, 4H)
        ifo = jax.nn.sigmoid(g[:, :3 * H])                     # one sigmoid: i|f|o
        g_new = jnp.tanh(g[:, 3 * H:])                         # one tanh: g
        c = ifo[:, H:2 * H] * c + ifo[:, :H] * g_new           # f*c + i*g
        h = ifo[:, 2 * H:3 * H] * jnp.tanh(c)                  # o*tanh(c)
        if seq_ref is not None:
            seq_ref[i] = h.astype(seq_ref.dtype)
        return (h, c)

    h, c = jax.lax.fori_loop(0, t_blk, step, (h_sc[...], c_sc[...]), unroll=True)
    h_sc[...] = h
    c_sc[...] = c
    return h


def _lstm_seq_kernel(g_ref, whh_ref, seq_ref, h_sc, c_sc):
    tt = pl.program_id(1)

    @pl.when(tt == 0)
    def _():
        h_sc[...] = jnp.zeros_like(h_sc)
        c_sc[...] = jnp.zeros_like(c_sc)

    _lstm_recurrence(g_ref, whh_ref, h_sc, c_sc, seq_ref=seq_ref)


def _lstm_head_kernel(g_ref, whh_ref, wlin_ref, blin_ref, emb_ref, h_sc, c_sc):
    tt = pl.program_id(1)

    @pl.when(tt == 0)
    def _():
        h_sc[...] = jnp.zeros_like(h_sc)
        c_sc[...] = jnp.zeros_like(c_sc)

    h = _lstm_recurrence(g_ref, whh_ref, h_sc, c_sc)

    # Fused head on the last time block: Linear -> ReLU -> L2-normalize (rsqrt + eps).
    @pl.when(tt == pl.num_programs(1) - 1)
    def _():
        e = jnp.dot(h.astype(wlin_ref.dtype), wlin_ref[...],
                    preferred_element_type=jnp.float32) + blin_ref[...]
        e = jnp.maximum(e, 0.0)
        inv = jax.lax.rsqrt(jnp.sum(e * e, axis=1, keepdims=True) + 1e-12)
        emb_ref[...] = (e * inv).astype(emb_ref.dtype)


def _gates_in_spec(t_blk, b_blk, g4, n_t):
    kwargs = {}
    if n_t >= 3:
        # Deeper pipeline for the streamed gate blocks (tiny per-block compute).
        kwargs["pipeline_mode"] = pl.Buffered(3)
    return pl.BlockSpec((t_blk, b_blk, g4), lambda bt, tt: (tt, bt, 0), **kwargs)


def lstm_seq_layer(gates, whh_t, *, t_blk_max=32, b_blk_max=64):
    """gates: (T, B_pad, 4H) bf16; whh_t: (H, 4H) bf16 -> seq (T, B_pad, H) bf16."""
    T, B_pad, G4 = gates.shape
    H = whh_t.shape[0]
    t_blk = _largest_divisor(T, t_blk_max)
    b_blk = _pick_batch_block(B_pad, b_blk_max)
    n_t, n_b = T // t_blk, B_pad // b_blk

    grid_spec = pltpu.PrefetchScalarGridSpec(
        num_scalar_prefetch=0,
        grid=(n_b, n_t),
        in_specs=[
            _gates_in_spec(t_blk, b_blk, G4, n_t),
            pl.BlockSpec((H, G4), lambda bt, tt: (0, 0)),
        ],
        out_specs=pl.BlockSpec((t_blk, b_blk, H), lambda bt, tt: (tt, bt, 0)),
        scratch_shapes=[
            pltpu.VMEM((b_blk, H), jnp.float32),
            pltpu.VMEM((b_blk, H), jnp.float32),
        ],
    )
    return pl.pallas_call(
        _lstm_seq_kernel,
        out_shape=jax.ShapeDtypeStruct((T, B_pad, H), jnp.bfloat16),
        grid_spec=grid_spec,
        compiler_params=pltpu.CompilerParams(
            dimension_semantics=("parallel", "arbitrary"),
            vmem_limit_bytes=_VMEM_LIMIT_BYTES),
    )(gates, whh_t)


def lstm_final_layer(gates, whh_t, wlin_t, blin, *, t_blk_max=32, b_blk_max=64):
    """Final LSTM layer with fused head -> embeddings (B_pad, E) f32."""
    T, B_pad, G4 = gates.shape
    H = whh_t.shape[0]
    E = wlin_t.shape[1]
    t_blk = _largest_divisor(T, t_blk_max)
    b_blk = _pick_batch_block(B_pad, b_blk_max)
    n_t, n_b = T // t_blk, B_pad // b_blk

    grid_spec = pltpu.PrefetchScalarGridSpec(
        num_scalar_prefetch=0,
        grid=(n_b, n_t),
        in_specs=[
            _gates_in_spec(t_blk, b_blk, G4, n_t),
            pl.BlockSpec((H, G4), lambda bt, tt: (0, 0)),
            pl.BlockSpec((H, E), lambda bt, tt: (0, 0)),
            pl.BlockSpec((1, E), lambda bt, tt: (0, 0)),
        ],
        out_specs=pl.BlockSpec((b_blk, E), lambda bt, tt: (bt, 0)),
        scratch_shapes=[
            pltpu.VMEM((b_blk, H), jnp.float32),
            pltpu.VMEM((b_blk, H), jnp.float32),
        ],
    )
    return pl.pallas_call(
        _lstm_head_kernel,
        out_shape=jax.ShapeDtypeStruct((B_pad, E), jnp.float32),
        grid_spec=grid_spec,
        compiler_params=pltpu.CompilerParams(
            dimension_semantics=("parallel", "arbitrary"),
            vmem_limit_bytes=_VMEM_LIMIT_BYTES),
    )(gates, whh_t, wlin_t, blin)


# ---------------------------------------------------------------------------
# Full forward: stacked LSTM layers (gate precompute + recurrent scan), fused head.
# ---------------------------------------------------------------------------
@functools.partial(jax.jit, static_argnames=("t_blk_max", "b_blk_max"))
def speaker_encoder_forward(utterances, params, *, t_blk_max=32, b_blk_max=64):
    # utterances: (B, T, C) batch-first, like PyTorch. hidden_init assumed None (zeros).
    B, T, C = utterances.shape
    B_pad = _round_up(B, 8)                                   # sublane-align the batch
    x = utterances.astype(jnp.bfloat16)
    if B_pad != B:
        x = jnp.pad(x, ((0, B_pad - B), (0, 0), (0, 0)))
    x = jnp.transpose(x, (1, 0, 2))                           # (T, B_pad, C) time-major

    n_layers = len(params["lstm"])
    emb = None
    for li, (wih_t, whh_t, bias) in enumerate(params["lstm"]):
        # Hoisted input-to-hidden matmul for the whole sequence (one big MXU matmul).
        gates = gates_matmul(x.reshape(T * B_pad, -1), wih_t, bias)
        gates = gates.reshape(T, B_pad, -1)
        if li == n_layers - 1:
            emb = lstm_final_layer(gates, whh_t, params["w_lin_t"], params["b_lin"],
                                   t_blk_max=t_blk_max, b_blk_max=b_blk_max)
        else:
            x = lstm_seq_layer(gates, whh_t,
                               t_blk_max=t_blk_max, b_blk_max=b_blk_max)
    return emb[:B]


# ---------------------------------------------------------------------------
# Parameters: PyTorch-style tensors, then a prep step (gate reorder + transpose + bf16).
# ---------------------------------------------------------------------------
def make_torch_style_params(key, mel_n_channels, hidden, num_layers, emb):
    params = {"lstm": []}
    scale = hidden ** -0.5
    for layer in range(num_layers):
        in_dim = mel_n_channels if layer == 0 else hidden
        key, k1, k2, k3, k4 = jax.random.split(key, 5)
        wih = jax.random.uniform(k1, (4 * hidden, in_dim), jnp.float32, -scale, scale)
        whh = jax.random.uniform(k2, (4 * hidden, hidden), jnp.float32, -scale, scale)
        bih = jax.random.uniform(k3, (4 * hidden,), jnp.float32, -scale, scale)
        bhh = jax.random.uniform(k4, (4 * hidden,), jnp.float32, -scale, scale)
        params["lstm"].append((wih, whh, bih, bhh))
    key, k5, k6 = jax.random.split(key, 3)
    params["w_lin"] = jax.random.uniform(k5, (emb, hidden), jnp.float32, -scale, scale)
    params["b_lin"] = jax.random.uniform(k6, (emb,), jnp.float32, -scale, scale)
    return params


def prepare_params(torch_params, compute_dtype=jnp.bfloat16):
    """Reorder PyTorch gate blocks [i,f,g,o] -> [i,f,o,g], transpose, cast to bf16."""
    def permute(w4h):
        H = w4h.shape[0] // 4
        return jnp.concatenate([w4h[0:2 * H], w4h[3 * H:4 * H], w4h[2 * H:3 * H]], axis=0)

    lstm = []
    for (wih, whh, bih, bhh) in torch_params["lstm"]:
        wih_t = permute(wih).T.astype(compute_dtype)          # (in, 4H)
        whh_t = permute(whh).T.astype(compute_dtype)          # (H, 4H)
        bias = permute(bih + bhh).reshape(1, -1).astype(jnp.float32)
        lstm.append((wih_t, whh_t, bias))
    return {
        "lstm": lstm,
        "w_lin_t": torch_params["w_lin"].T.astype(compute_dtype),   # (H, E)
        "b_lin": torch_params["b_lin"].reshape(1, -1).astype(jnp.float32),
    }


# ---------------------------------------------------------------------------
# Pure-JAX f32 reference (PyTorch semantics) for a sanity check.
# ---------------------------------------------------------------------------
def reference_forward(utterances, torch_params):
    x = utterances.astype(jnp.float32)                        # (B, T, C)
    B, T, _ = x.shape
    h_seq = jnp.transpose(x, (1, 0, 2))                       # (T, B, C)
    h_last = None
    for (wih, whh, bih, bhh) in torch_params["lstm"]:
        H = whh.shape[1]
        h = jnp.zeros((B, H), jnp.float32)
        c = jnp.zeros((B, H), jnp.float32)
        outs = []
        for t in range(T):
            g = h_seq[t] @ wih.T + h @ whh.T + bih + bhh
            i = jax.nn.sigmoid(g[:, 0:H])
            f = jax.nn.sigmoid(g[:, H:2 * H])
            gg = jnp.tanh(g[:, 2 * H:3 * H])
            o = jax.nn.sigmoid(g[:, 3 * H:4 * H])
            c = f * c + i * gg
            h = o * jnp.tanh(c)
            outs.append(h)
        h_seq = jnp.stack(outs, axis=0)
        h_last = h
    e = jnp.maximum(h_last @ torch_params["w_lin"].T + torch_params["b_lin"], 0.0)
    return e / jnp.sqrt(jnp.sum(e * e, axis=1, keepdims=True))


if __name__ == "__main__":
    mel_n_channels = 16
    model_hidden_size = 32        # 4H = 128 -> lane-aligned gate tensor
    model_num_layers = 2
    model_embedding_size = 16
    batch, n_frames = 2, 8

    key = jax.random.PRNGKey(0)
    key, pkey, xkey = jax.random.split(key, 3)
    torch_params = make_torch_style_params(
        pkey, mel_n_channels, model_hidden_size, model_num_layers, model_embedding_size)
    params = prepare_params(torch_params)
    utterances = jax.random.normal(
        xkey, (batch, n_frames, mel_n_channels), jnp.float32)

    embeds = speaker_encoder_forward(utterances, params)
    embeds = jax.block_until_ready(embeds)

    ref = reference_forward(utterances, torch_params)
    assert embeds.shape == (batch, model_embedding_size)
    # bf16 MXU operands / bf16 inter-layer activations -> relaxed tolerance vs f32 ref.
    assert jnp.allclose(embeds, ref, atol=2e-2, rtol=2e-2), "mismatch vs reference"

    print("KERNEL_OK")
</pallas_src>

<mosaic_0001>
module attributes {stable_mosaic.version = 11 : i64} {
  func.func @_gates_kernel(%arg0: i32, %arg1: memref<64x32xbf16, #tpu.memory_space<vmem>>, %arg2: memref<32x128xbf16, #tpu.memory_space<vmem>>, %arg3: memref<1x128xf32, #tpu.memory_space<vmem>>, %arg4: memref<64x128xbf16, #tpu.memory_space<vmem>>) attributes {dimension_semantics = [#tpu.dimension_semantics<parallel>], iteration_bounds = array<i64: 1>, scalar_prefetch = 0 : i64, scratch_operands = 0 : i64, tpu.core_type = #tpu.core_type<tc>, window_params = [{transform_indices = @transform_0, window_bounds = array<i64: 64, 32>}, {pipeline_mode = #tpu.pipeline_mode<synchronous>, transform_indices = @transform_1, window_bounds = array<i64: 32, 128>}, {pipeline_mode = #tpu.pipeline_mode<synchronous>, transform_indices = @transform_2, window_bounds = array<i64: 1, 128>}, {transform_indices = @transform_3, window_bounds = array<i64: 64, 128>}]} {
    %c0 = arith.constant 0 : index
    %c0_0 = arith.constant 0 : index
    %0 = vector.load %arg1[%c0, %c0_0] : memref<64x32xbf16, #tpu.memory_space<vmem>>, vector<64x32xbf16>
    %c0_1 = arith.constant 0 : index
    %c0_2 = arith.constant 0 : index
    %1 = vector.load %arg2[%c0_1, %c0_2] : memref<32x128xbf16, #tpu.memory_space<vmem>>, vector<32x128xbf16>
    %cst = arith.constant dense<0.000000e+00> : vector<64x128xf32>
    %2 = tpu.matmul %0, %1, %cst {dimension_numbers = #tpu.dot_dimension_numbers<[1], [0], [0], [1], [0, 0, 1, 1], [], []>} : vector<64x32xbf16>, vector<32x128xbf16>, vector<64x128xf32> -> vector<64x128xf32>
    %c0_3 = arith.constant 0 : index
    %c0_4 = arith.constant 0 : index
    %3 = vector.load %arg3[%c0_3, %c0_4] : memref<1x128xf32, #tpu.memory_space<vmem>>, vector<1x128xf32>
    %4 = vector.broadcast %3 : vector<1x128xf32> to vector<64x128xf32>
    %5 = arith.addf %2, %4 : vector<64x128xf32>
    %6 = arith.truncf %5 : vector<64x128xf32> to vector<64x128xbf16>
    %c0_5 = arith.constant 0 : index
    %c0_6 = arith.constant 0 : index
    %7 = vector.load %arg4[%c0_5, %c0_6] : memref<64x128xbf16, #tpu.memory_space<vmem>>, vector<64x128xbf16>
    tpu.vector_store %arg4[%c0_5, %c0_6], %6 {strides = array<i32>} : memref<64x128xbf16, #tpu.memory_space<vmem>>, vector<64x128xbf16>,
    return
  }
  func.func @transform_0(%arg0: i32) -> (i32, i32) {
    %c0_i32 = arith.constant 0 : i32
    %c0_i32_0 = arith.constant 0 : i32
    return %arg0, %c0_i32 : i32, i32
  }
  func.func @transform_1(%arg0: i32) -> (i32, i32) {
    %c0_i32 = arith.constant 0 : i32
    %c0_i32_0 = arith.constant 0 : i32
    %c0_i32_1 = arith.constant 0 : i32
    return %c0_i32, %c0_i32_0 : i32, i32
  }
  func.func @transform_2(%arg0: i32) -> (i32, i32) {
    %c0_i32 = arith.constant 0 : i32
    %c0_i32_0 = arith.constant 0 : i32
    %c0_i32_1 = arith.constant 0 : i32
    return %c0_i32, %c0_i32_0 : i32, i32
  }
  func.func @transform_3(%arg0: i32) -> (i32, i32) {
    %c0_i32 = arith.constant 0 : i32
    %c0_i32_0 = arith.constant 0 : i32
    return %arg0, %c0_i32 : i32, i32
  }
}

module attributes {stable_mosaic.version = 11 : i64} {
  func.func @_gates_kernel(%arg0: i32, %arg1: memref<64x16xbf16, #tpu.memory_space<vmem>>, %arg2: memref<16x128xbf16, #tpu.memory_space<vmem>>, %arg3: memref<1x128xf32, #tpu.memory_space<vmem>>, %arg4: memref<64x128xbf16, #tpu.memory_space<vmem>>) attributes {dimension_semantics = [#tpu.dimension_semantics<parallel>], iteration_bounds = array<i64: 1>, scalar_prefetch = 0 : i64, scratch_operands = 0 : i64, tpu.core_type = #tpu.core_type<tc>, window_params = [{transform_indices = @transform_0, window_bounds = array<i64: 64, 16>}, {pipeline_mode = #tpu.pipeline_mode<synchronous>, transform_indices = @transform_1, window_bounds = array<i64: 16, 128>}, {pipeline_mode = #tpu.pipeline_mode<synchronous>, transform_indices = @transform_2, window_bounds = array<i64: 1, 128>}, {transform_indices = @transform_3, window_bounds = array<i64: 64, 128>}]} {
    %c0 = arith.constant 0 : index
    %c0_0 = arith.constant 0 : index
    %0 = vector.load %arg1[%c0, %c0_0] : memref<64x16xbf16, #tpu.memory_space<vmem>>, vector<64x16xbf16>
    %c0_1 = arith.constant 0 : index
    %c0_2 = arith.constant 0 : index
    %1 = vector.load %arg2[%c0_1, %c0_2] : memref<16x128xbf16, #tpu.memory_space<vmem>>, vector<16x128xbf16>
    %cst = arith.constant dense<0.000000e+00> : vector<64x128xf32>
    %2 = tpu.matmul %0, %1, %cst {dimension_numbers = #tpu.dot_dimension_numbers<[1], [0], [0], [1], [0, 0, 1, 1], [], []>} : vector<64x16xbf16>, vector<16x128xbf16>, vector<64x128xf32> -> vector<64x128xf32>
    %c0_3 = arith.constant 0 : index
    %c0_4 = arith.constant 0 : index
    %3 = vector.load %arg3[%c0_3, %c0_4] : memref<1x128xf32, #tpu.memory_space<vmem>>, vector<1x128xf32>
    %4 = vector.broadcast %3 : vector<1x128xf32> to vector<64x128xf32>
    %5 = arith.addf %2, %4 : vector<64x128xf32>
    %6 = arith.truncf %5 : vector<64x128xf32> to vector<64x128xbf16>
    %c0_5 = arith.constant 0 : index
    %c0_6 = arith.constant 0 : index
    %7 = vector.load %arg4[%c0_5, %c0_6] : memref<64x128xbf16, #tpu.memory_space<vmem>>, vector<64x128xbf16>
    tpu.vector_store %arg4[%c0_5, %c0_6], %6 {strides = array<i32>} : memref<64x128xbf16, #tpu.memory_space<vmem>>, vector<64x128xbf16>,
    return
  }
  func.func @transform_0(%arg0: i32) -> (i32, i32) {
    %c0_i32 = arith.constant 0 : i32
    %c0_i32_0 = arith.constant 0 : i32
    return %arg0, %c0_i32 : i32, i32
  }
  func.func @transform_1(%arg0: i32) -> (i32, i32) {
    %c0_i32 = arith.constant 0 : i32
    %c0_i32_0 = arith.constant 0 : i32
    %c0_i32_1 = arith.constant 0 : i32
    return %c0_i32, %c0_i32_0 : i32, i32
  }
  func.func @transform_2(%arg0: i32) -> (i32, i32) {
    %c0_i32 = arith.constant 0 : i32
    %c0_i32_0 = arith.constant 0 : i32
    %c0_i32_1 = arith.constant 0 : i32
    return %c0_i32, %c0_i32_0 : i32, i32
  }
  func.func @transform_3(%arg0: i32) -> (i32, i32) {
    %c0_i32 = arith.constant 0 : i32
    %c0_i32_0 = arith.constant 0 : i32
    return %arg0, %c0_i32 : i32, i32
  }
}

module attributes {stable_mosaic.version = 11 : i64} {
  func.func @_lstm_head_kernel(%arg0: i32, %arg1: i32, %arg2: memref<8x8x128xbf16, #tpu.memory_space<vmem>>, %arg3: memref<32x128xbf16, #tpu.memory_space<vmem>>, %arg4: memref<32x16xbf16, #tpu.memory_space<vmem>>, %arg5: memref<1x16xf32, #tpu.memory_space<vmem>>, %arg6: memref<8x16xf32, #tpu.memory_space<vmem>>, %arg7: memref<8x32xf32, #tpu.memory_space<vmem>>, %arg8: memref<8x32xf32, #tpu.memory_space<vmem>>) attributes {dimension_semantics = [#tpu.dimension_semantics<parallel>, #tpu.dimension_semantics<arbitrary>], iteration_bounds = array<i64: 1, 1>, scalar_prefetch = 0 : i64, scratch_operands = 2 : i64, tpu.core_type = #tpu.core_type<tc>, window_params = [{transform_indices = @transform_0, window_bounds = array<i64: 8, 8, 128>}, {pipeline_mode = #tpu.pipeline_mode<synchronous>, transform_indices = @transform_1, window_bounds = array<i64: 32, 128>}, {pipeline_mode = #tpu.pipeline_mode<synchronous>, transform_indices = @transform_2, window_bounds = array<i64: 32, 16>}, {pipeline_mode = #tpu.pipeline_mode<synchronous>, transform_indices = @transform_3, window_bounds = array<i64: 1, 16>}, {transform_indices = @transform_4, window_bounds = array<i64: 8, 16>}]} {
    %c0_i32 = arith.constant 0 : i32
    %0 = arith.cmpi eq, %arg1, %c0_i32 : i32
    %1 = arith.extui %0 : i1 to i32
    %c0_i32_0 = arith.constant 0 : i32
    %2 = arith.cmpi ne, %1, %c0_i32_0 : i32
    scf.if %2 {
      %cst_44 = arith.constant 0.000000e+00 : f32
      %195 = vector.broadcast %cst_44 : f32 to vector<8x32xf32>
      %c0_45 = arith.constant 0 : index
      %c0_46 = arith.constant 0 : index
      %196 = vector.load %arg7[%c0_45, %c0_46] : memref<8x32xf32, #tpu.memory_space<vmem>>, vector<8x32xf32>
      tpu.vector_store %arg7[%c0_45, %c0_46], %195 {strides = array<i32>} : memref<8x32xf32, #tpu.memory_space<vmem>>, vector<8x32xf32>,
      %cst_47 = arith.constant 0.000000e+00 : f32
      %197 = vector.broadcast %cst_47 : f32 to vector<8x32xf32>
      %c0_48 = arith.constant 0 : index
      %c0_49 = arith.constant 0 : index
      %198 = vector.load %arg8[%c0_48, %c0_49] : memref<8x32xf32, #tpu.memory_space<vmem>>, vector<8x32xf32>
      tpu.vector_store %arg8[%c0_48, %c0_49], %197 {strides = array<i32>} : memref<8x32xf32, #tpu.memory_space<vmem>>, vector<8x32xf32>,
    } else {
    }
    %c0 = arith.constant 0 : index
    %c0_1 = arith.constant 0 : index
    %3 = vector.load %arg3[%c0, %c0_1] : memref<32x128xbf16, #tpu.memory_space<vmem>>, vector<32x128xbf16>
    %c0_2 = arith.constant 0 : index
    %c0_3 = arith.constant 0 : index
    %4 = vector.load %arg7[%c0_2, %c0_3] : memref<8x32xf32, #tpu.memory_space<vmem>>, vector<8x32xf32>
    %c0_4 = arith.constant 0 : index
    %c0_5 = arith.constant 0 : index
    %5 = vector.load %arg8[%c0_4, %c0_5] : memref<8x32xf32, #tpu.memory_space<vmem>>, vector<8x32xf32>
    %c0_i32_6 = arith.constant 0 : i32
    %6 = arith.index_cast %c0_i32_6 : i32 to index
    %c0_7 = arith.constant 0 : index
    %c0_8 = arith.constant 0 : index
    %7 = vector.load %arg2[%6, %c0_7, %c0_8] : memref<8x8x128xbf16, #tpu.memory_space<vmem>>, vector<1x8x128xbf16>
    %8 = vector.shape_cast %7 : vector<1x8x128xbf16> to vector<8x128xbf16>
    %9 = arith.extf %8 : vector<8x128xbf16> to vector<8x128xf32>
    %10 = arith.truncf %4 : vector<8x32xf32> to vector<8x32xbf16>
    %cst = arith.constant dense<0.000000e+00> : vector<8x128xf32>
    %11 = tpu.matmul %10, %3, %cst {dimension_numbers = #tpu.dot_dimension_numbers<[1], [0], [0], [1], [0, 0, 1, 1], [], []>} : vector<8x32xbf16>, vector<32x128xbf16>, vector<8x128xf32> -> vector<8x128xf32>
    %12 = arith.addf %9, %11 : vector<8x128xf32>
    %13 = vector.extract_strided_slice %12 {offsets = [0, 0], sizes = [8, 96], strides = [1, 1]} : vector<8x128xf32> to vector<8x96xf32>
    %14 = arith.negf %13 : vector<8x96xf32>
    %15 = math.exp %14 : vector<8x96xf32>
    %cst_9 = arith.constant 1.000000e+00 : f32
    %16 = vector.broadcast %cst_9 : f32 to vector<8x96xf32>
    %17 = arith.addf %16, %15 : vector<8x96xf32>
    %18 = arith.divf %16, %17 : vector<8x96xf32>
    %19 = vector.extract_strided_slice %12 {offsets = [0, 96], sizes = [8, 32], strides = [1, 1]} : vector<8x128xf32> to vector<8x32xf32>
    %20 = math.tanh %19 : vector<8x32xf32>
    %21 = vector.extract_strided_slice %18 {offsets = [0, 32], sizes = [8, 32], strides = [1, 1]} : vector<8x96xf32> to vector<8x32xf32>
    %22 = arith.mulf %21, %5 : vector<8x32xf32>
    %23 = vector.extract_strided_slice %18 {offsets = [0, 0], sizes = [8, 32], strides = [1, 1]} : vector<8x96xf32> to vector<8x32xf32>
    %24 = arith.mulf %23, %20 : vector<8x32xf32>
    %25 = arith.addf %22, %24 : vector<8x32xf32>
    %26 = vector.extract_strided_slice %18 {offsets = [0, 64], sizes = [8, 32], strides = [1, 1]} : vector<8x96xf32> to vector<8x32xf32>
    %27 = math.tanh %25 : vector<8x32xf32>
    %28 = arith.mulf %26, %27 : vector<8x32xf32>
    %c1_i32 = arith.constant 1 : i32
    %29 = arith.index_cast %c1_i32 : i32 to index
    %c0_10 = arith.constant 0 : index
    %c0_11 = arith.constant 0 : index
    %30 = vector.load %arg2[%29, %c0_10, %c0_11] : memref<8x8x128xbf16, #tpu.memory_space<vmem>>, vector<1x8x128xbf16>
    %31 = vector.shape_cast %30 : vector<1x8x128xbf16> to vector<8x128xbf16>
    %32 = arith.extf %31 : vector<8x128xbf16> to vector<8x128xf32>
    %33 = arith.truncf %28 : vector<8x32xf32> to vector<8x32xbf16>
    %cst_12 = arith.constant dense<0.000000e+00> : vector<8x128xf32>
    %34 = tpu.matmul %33, %3, %cst_12 {dimension_numbers = #tpu.dot_dimension_numbers<[1], [0], [0], [1], [0, 0, 1, 1], [], []>} : vector<8x32xbf16>, vector<32x128xbf16>, vector<8x128xf32> -> vector<8x128xf32>
    %35 = arith.addf %32, %34 : vector<8x128xf32>
    %36 = vector.extract_strided_slice %35 {offsets = [0, 0], sizes = [8, 96], strides = [1, 1]} : vector<8x128xf32> to vector<8x96xf32>
    %37 = arith.negf %36 : vector<8x96xf32>
    %38 = math.exp %37 : vector<8x96xf32>
    %cst_13 = arith.constant 1.000000e+00 : f32
    %39 = vector.broadcast %cst_13 : f32 to vector<8x96xf32>
    %40 = arith.addf %39, %38 : vector<8x96xf32>
    %41 = arith.divf %39, %40 : vector<8x96xf32>
    %42 = vector.extract_strided_slice %35 {offsets = [0, 96], sizes = [8, 32], strides = [1, 1]} : vector<8x128xf32> to vector<8x32xf32>
    %43 = math.tanh %42 : vector<8x32xf32>
    %44 = vector.extract_strided_slice %41 {offsets = [0, 32], sizes = [8, 32], strides = [1, 1]} : vector<8x96xf32> to vector<8x32xf32>
    %45 = arith.mulf %44, %25 : vector<8x32xf32>
    %46 = vector.extract_strided_slice %41 {offsets = [0, 0], sizes = [8, 32], strides = [1, 1]} : vector<8x96xf32> to vector<8x32xf32>
    %47 = arith.mulf %46, %43 : vector<8x32xf32>
    %48 = arith.addf %45, %47 : vector<8x32xf32>
    %49 = vector.extract_strided_slice %41 {offsets = [0, 64], sizes = [8, 32], strides = [1, 1]} : vector<8x96xf32> to vector<8x32xf32>
    %50 = math.tanh %48 : vector<8x32xf32>
    %51 = arith.mulf %49, %50 : vector<8x32xf32>
    %c2_i32 = arith.constant 2 : i32
    %52 = arith.index_cast %c2_i32 : i32 to index
    %c0_14 = arith.constant 0 : index
    %c0_15 = arith.constant 0 : index
    %53 = vector.load %arg2[%52, %c0_14, %c0_15] : memref<8x8x128xbf16, #tpu.memory_space<vmem>>, vector<1x8x128xbf16>
    %54 = vector.shape_cast %53 : vector<1x8x128xbf16> to vector<8x128xbf16>
    %55 = arith.extf %54 : vector<8x128xbf16> to vector<8x128xf32>
    %56 = arith.truncf %51 : vector<8x32xf32> to vector<8x32xbf16>
    %cst_16 = arith.constant dense<0.000000e+00> : vector<8x128xf32>
    %57 = tpu.matmul %56, %3, %cst_16 {dimension_numbers = #tpu.dot_dimension_numbers<[1], [0], [0], [1], [0, 0, 1, 1], [], []>} : vector<8x32xbf16>, vector<32x128xbf16>, vector<8x128xf32> -> vector<8x128xf32>
    %58 = arith.addf %55, %57 : vector<8x128xf32>
    %59 = vector.extract_strided_slice %58 {offsets = [0, 0], sizes = [8, 96], strides = [1, 1]} : vector<8x128xf32> to vector<8x96xf32>
    %60 = arith.negf %59 : vector<8x96xf32>
    %61 = math.exp %60 : vector<8x96xf32>
    %cst_17 = arith.constant 1.000000e+00 : f32
    %62 = vector.broadcast %cst_17 : f32 to vector<8x96xf32>
    %63 = arith.addf %62, %61 : vector<8x96xf32>
    %64 = arith.divf %62, %63 : vector<8x96xf32>
    %65 = vector.extract_strided_slice %58 {offsets = [0, 96], sizes = [8, 32], strides = [1, 1]} : vector<8x128xf32> to vector<8x32xf32>
    %66 = math.tanh %65 : vector<8x32xf32>
    %67 = vector.extract_strided_slice %64 {offsets = [0, 32], sizes = [8, 32], strides = [1, 1]} : vector<8x96xf32> to vector<8x32xf32>
    %68 = arith.mulf %67, %48 : vector<8x32xf32>
    %69 = vector.extract_strided_slice %64 {offsets = [0, 0], sizes = [8, 32], strides = [1, 1]} : vector<8x96xf32> to vector<8x32xf32>
    %70 = arith.mulf %69, %66 : vector<8x32xf32>
    %71 = arith.addf %68, %70 : vector<8x32xf32>
    %72 = vector.extract_strided_slice %64 {offsets = [0, 64], sizes = [8, 32], strides = [1, 1]} : vector<8x96xf32> to vector<8x32xf32>
    %73 = math.tanh %71 : vector<8x32xf32>
    %74 = arith.mulf %72, %73 : vector<8x32xf32>
    %c3_i32 = arith.constant 3 : i32
    %75 = arith.index_cast %c3_i32 : i32 to index
    %c0_18 = arith.constant 0 : index
    %c0_19 = arith.constant 0 : index
    %76 = vector.load %arg2[%75, %c0_18, %c0_19] : memref<8x8x128xbf16, #tpu.memory_space<vmem>>, vector<1x8x128xbf16>
    %77 = vector.shape_cast %76 : vector<1x8x128xbf16> to vector<8x128xbf16>
    %78 = arith.extf %77 : vector<8x128xbf16> to vector<8x128xf32>
    %79 = arith.truncf %74 : vector<8x32xf32> to vector<8x32xbf16>
    %cst_20 = arith.constant dense<0.000000e+00> : vector<8x128xf32>
    %80 = tpu.matmul %79, %3, %cst_20 {dimension_numbers = #tpu.dot_dimension_numbers<[1], [0], [0], [1], [0, 0, 1, 1], [], []>} : vector<8x32xbf16>, vector<32x128xbf16>, vector<8x128xf32> -> vector<8x128xf32>
    %81 = arith.addf %78, %80 : vector<8x128xf32>
    %82 = vector.extract_strided_slice %81 {offsets = [0, 0], sizes = [8, 96], strides = [1, 1]} : vector<8x128xf32> to vector<8x96xf32>
    %83 = arith.negf %82 : vector<8x96xf32>
    %84 = math.exp %83 : vector<8x96xf32>
    %cst_21 = arith.constant 1.000000e+00 : f32
    %85 = vector.broadcast %cst_21 : f32 to vector<8x96xf32>
    %86 = arith.addf %85, %84 : vector<8x96xf32>
    %87 = arith.divf %85, %86 : vector<8x96xf32>
    %88 = vector.extract_strided_slice %81 {offsets = [0, 96], sizes = [8, 32], strides = [1, 1]} : vector<8x128xf32> to vector<8x32xf32>
    %89 = math.tanh %88 : vector<8x32xf32>
    %90 = vector.extract_strided_slice %87 {offsets = [0, 32], sizes = [8, 32], strides = [1, 1]} : vector<8x96xf32> to vector<8x32xf32>
    %91 = arith.mulf %90, %71 : vector<8x32xf32>
    %92 = vector.extract_strided_slice %87 {offsets = [0, 0], sizes = [8, 32], strides = [1, 1]} : vector<8x96xf32> to vector<8x32xf32>
    %93 = arith.mulf %92, %89 : vector<8x32xf32>
    %94 = arith.addf %91, %93 : vector<8x32xf32>
    %95 = vector.extract_strided_slice %87 {offsets = [0, 64], sizes = [8, 32], strides = [1, 1]} : vector<8x96xf32> to vector<8x32xf32>
    %96 = math.tanh %94 : vector<8x32xf32>
    %97 = arith.mulf %95, %96 : vector<8x32xf32>
    %c4_i32 = arith.constant 4 : i32
    %98 = arith.index_cast %c4_i32 : i32 to index
    %c0_22 = arith.constant 0 : index
    %c0_23 = arith.constant 0 : index
    %99 = vector.load %arg2[%98, %c0_22, %c0_23] : memref<8x8x128xbf16, #tpu.memory_space<vmem>>, vector<1x8x128xbf16>
    %100 = vector.shape_cast %99 : vector<1x8x128xbf16> to vector<8x128xbf16>
    %101 = arith.extf %100 : vector<8x128xbf16> to vector<8x128xf32>
    %102 = arith.truncf %97 : vector<8x32xf32> to vector<8x32xbf16>
    %cst_24 = arith.constant dense<0.000000e+00> : vector<8x128xf32>
    %103 = tpu.matmul %102, %3, %cst_24 {dimension_numbers = #tpu.dot_dimension_numbers<[1], [0], [0], [1], [0, 0, 1, 1], [], []>} : vector<8x32xbf16>, vector<32x128xbf16>, vector<8x128xf32> -> vector<8x128xf32>
    %104 = arith.addf %101, %103 : vector<8x128xf32>
    %105 = vector.extract_strided_slice %104 {offsets = [0, 0], sizes = [8, 96], strides = [1, 1]} : vector<8x128xf32> to vector<8x96xf32>
    %106 = arith.negf %105 : vector<8x96xf32>
    %107 = math.exp %106 : vector<8x96xf32>
    %cst_25 = arith.constant 1.000000e+00 : f32
    %108 = vector.broadcast %cst_25 : f32 to vector<8x96xf32>
    %109 = arith.addf %108, %107 : vector<8x96xf32>
    %110 = arith.divf %108, %109 : vector<8x96xf32>
    %111 = vector.extract_strided_slice %104 {offsets = [0, 96], sizes = [8, 32], strides = [1, 1]} : vector<8x128xf32> to vector<8x32xf32>
    %112 = math.tanh %111 : vector<8x32xf32>
    %113 = vector.extract_strided_slice %110 {offsets = [0, 32], sizes = [8, 32], strides = [1, 1]} : vector<8x96xf32> to vector<8x32xf32>
    %114 = arith.mulf %113, %94 : vector<8x32xf32>
    %115 = vector.extract_strided_slice %110 {offsets = [0, 0], sizes = [8, 32], strides = [1, 1]} : vector<8x96xf32> to vector<8x32xf32>
    %116 = arith.mulf %115, %112 : vector<8x32xf32>
    %117 = arith.addf %114, %116 : vector<8x32xf32>
    %118 = vector.extract_strided_slice %110 {offsets = [0, 64], sizes = [8, 32], strides = [1, 1]} : vector<8x96xf32> to vector<8x32xf32>
    %119 = math.tanh %117 : vector<8x32xf32>
    %120 = arith.mulf %118, %119 : vector<8x32xf32>
    %c5_i32 = arith.constant 5 : i32
    %121 = arith.index_cast %c5_i32 : i32 to index
    %c0_26 = arith.constant 0 : index
    %c0_27 = arith.constant 0 : index
    %122 = vector.load %arg2[%121, %c0_26, %c0_27] : memref<8x8x128xbf16, #tpu.memory_space<vmem>>, vector<1x8x128xbf16>
    %123 = vector.shape_cast %122 : vector<1x8x128xbf16> to vector<8x128xbf16>
    %124 = arith.extf %123 : vector<8x128xbf16> to vector<8x128xf32>
    %125 = arith.truncf %120 : vector<8x32xf32> to vector<8x32xbf16>
    %cst_28 = arith.constant dense<0.000000e+00> : vector<8x128xf32>
    %126 = tpu.matmul %125, %3, %cst_28 {dimension_numbers = #tpu.dot_dimension_numbers<[1], [0], [0], [1], [0, 0, 1, 1], [], []>} : vector<8x32xbf16>, vector<32x128xbf16>, vector<8x128xf32> -> vector<8x128xf32>
    %127 = arith.addf %124, %126 : vector<8x128xf32>
    %128 = vector.extract_strided_slice %127 {offsets = [0, 0], sizes = [8, 96], strides = [1, 1]} : vector<8x128xf32> to vector<8x96xf32>
    %129 = arith.negf %128 : vector<8x96xf32>
    %130 = math.exp %129 : vector<8x96xf32>
    %cst_29 = arith.constant 1.000000e+00 : f32
    %131 = vector.broadcast %cst_29 : f32 to vector<8x96xf32>
    %132 = arith.addf %131, %130 : vector<8x96xf32>
    %133 = arith.divf %131, %132 : vector<8x96xf32>
    %134 = vector.extract_strided_slice %127 {offsets = [0, 96], sizes = [8, 32], strides = [1, 1]} : vector<8x128xf32> to vector<8x32xf32>
    %135 = math.tanh %134 : vector<8x32xf32>
    %136 = vector.extract_strided_slice %133 {offsets = [0, 32], sizes = [8, 32], strides = [1, 1]} : vector<8x96xf32> to vector<8x32xf32>
    %137 = arith.mulf %136, %117 : vector<8x32xf32>
    %138 = vector.extract_strided_slice %133 {offsets = [0, 0], sizes = [8, 32], strides = [1, 1]} : vector<8x96xf32> to vector<8x32xf32>
    %139 = arith.mulf %138, %135 : vector<8x32xf32>
    %140 = arith.addf %137, %139 : vector<8x32xf32>
    %141 = vector.extract_strided_slice %133 {offsets = [0, 64], sizes = [8, 32], strides = [1, 1]} : vector<8x96xf32> to vector<8x32xf32>
    %142 = math.tanh %140 : vector<8x32xf32>
    %143 = arith.mulf %141, %142 : vector<8x32xf32>
    %c6_i32 = arith.constant 6 : i32
    %144 = arith.index_cast %c6_i32 : i32 to index
    %c0_30 = arith.constant 0 : index
    %c0_31 = arith.constant 0 : index
    %145 = vector.load %arg2[%144, %c0_30, %c0_31] : memref<8x8x128xbf16, #tpu.memory_space<vmem>>, vector<1x8x128xbf16>
    %146 = vector.shape_cast %145 : vector<1x8x128xbf16> to vector<8x128xbf16>
    %147 = arith.extf %146 : vector<8x128xbf16> to vector<8x128xf32>
    %148 = arith.truncf %143 : vector<8x32xf32> to vector<8x32xbf16>
    %cst_32 = arith.constant dense<0.000000e+00> : vector<8x128xf32>
    %149 = tpu.matmul %148, %3, %cst_32 {dimension_numbers = #tpu.dot_dimension_numbers<[1], [0], [0], [1], [0, 0, 1, 1], [], []>} : vector<8x32xbf16>, vector<32x128xbf16>, vector<8x128xf32> -> vector<8x128xf32>
    %150 = arith.addf %147, %149 : vector<8x128xf32>
    %151 = vector.extract_strided_slice %150 {offsets = [0, 0], sizes = [8, 96], strides = [1, 1]} : vector<8x128xf32> to vector<8x96xf32>
    %152 = arith.negf %151 : vector<8x96xf32>
    %153 = math.exp %152 : vector<8x96xf32>
    %cst_33 = arith.constant 1.000000e+00 : f32
    %154 = vector.broadcast %cst_33 : f32 to vector<8x96xf32>
    %155 = arith.addf %154, %153 : vector<8x96xf32>
    %156 = arith.divf %154, %155 : vector<8x96xf32>
    %157 = vector.extract_strided_slice %150 {offsets = [0, 96], sizes = [8, 32], strides = [1, 1]} : vector<8x128xf32> to vector<8x32xf32>
    %158 = math.tanh %157 : vector<8x32xf32>
    %159 = vector.extract_strided_slice %156 {offsets = [0, 32], sizes = [8, 32], strides = [1, 1]} : vector<8x96xf32> to vector<8x32xf32>
    %160 = arith.mulf %159, %140 : vector<8x32xf32>
    %161 = vector.extract_strided_slice %156 {offsets = [0, 0], sizes = [8, 32], strides = [1, 1]} : vector<8x96xf32> to vector<8x32xf32>
    %162 = arith.mulf %161, %158 : vector<8x32xf32>
    %163 = arith.addf %160, %162 : vector<8x32xf32>
    %164 = vector.extract_strided_slice %156 {offsets = [0, 64], sizes = [8, 32], strides = [1, 1]} : vector<8x96xf32> to vector<8x32xf32>
    %165 = math.tanh %163 : vector<8x32xf32>
    %166 = arith.mulf %164, %165 : vector<8x32xf32>
    %c7_i32 = arith.constant 7 : i32
    %167 = arith.index_cast %c7_i32 : i32 to index
    %c0_34 = arith.constant 0 : index
    %c0_35 = arith.constant 0 : index
    %168 = vector.load %arg2[%167, %c0_34, %c0_35] : memref<8x8x128xbf16, #tpu.memory_space<vmem>>, vector<1x8x128xbf16>
    %169 = vector.shape_cast %168 : vector<1x8x128xbf16> to vector<8x128xbf16>
    %170 = arith.extf %169 : vector<8x128xbf16> to vector<8x128xf32>
    %171 = arith.truncf %166 : vector<8x32xf32> to vector<8x32xbf16>
    %cst_36 = arith.constant dense<0.000000e+00> : vector<8x128xf32>
    %172 = tpu.matmul %171, %3, %cst_36 {dimension_numbers = #tpu.dot_dimension_numbers<[1], [0], [0], [1], [0, 0, 1, 1], [], []>} : vector<8x32xbf16>, vector<32x128xbf16>, vector<8x128xf32> -> vector<8x128xf32>
    %173 = arith.addf %170, %172 : vector<8x128xf32>
    %174 = vector.extract_strided_slice %173 {offsets = [0, 0], sizes = [8, 96], strides = [1, 1]} : vector<8x128xf32> to vector<8x96xf32>
    %175 = arith.negf %174 : vector<8x96xf32>
    %176 = math.exp %175 : vector<8x96xf32>
    %cst_37 = arith.constant 1.000000e+00 : f32
    %177 = vector.broadcast %cst_37 : f32 to vector<8x96xf32>
    %178 = arith.addf %177, %176 : vector<8x96xf32>
    %179 = arith.divf %177, %178 : vector<8x96xf32>
    %180 = vector.extract_strided_slice %173 {offsets = [0, 96], sizes = [8, 32], strides = [1, 1]} : vector<8x128xf32> to vector<8x32xf32>
    %181 = math.tanh %180 : vector<8x32xf32>
    %182 = vector.extract_strided_slice %179 {offsets = [0, 32], sizes = [8, 32], strides = [1, 1]} : vector<8x96xf32> to vector<8x32xf32>
    %183 = arith.mulf %182, %163 : vector<8x32xf32>
    %184 = vector.extract_strided_slice %179 {offsets = [0, 0], sizes = [8, 32], strides = [1, 1]} : vector<8x96xf32> to vector<8x32xf32>
    %185 = arith.mulf %184, %181 : vector<8x32xf32>
    %186 = arith.addf %183, %185 : vector<8x32xf32>
    %187 = vector.extract_strided_slice %179 {offsets = [0, 64], sizes = [8, 32], strides = [1, 1]} : vector<8x96xf32> to vector<8x32xf32>
    %188 = math.tanh %186 : vector<8x32xf32>
    %189 = arith.mulf %187, %188 : vector<8x32xf32>
    %c8_i32 = arith.constant 8 : i32
    %c0_38 = arith.constant 0 : index
    %c0_39 = arith.constant 0 : index
    %190 = vector.load %arg7[%c0_38, %c0_39] : memref<8x32xf32, #tpu.memory_space<vmem>>, vector<8x32xf32>
    tpu.vector_store %arg7[%c0_38, %c0_39], %189 {strides = array<i32>} : memref<8x32xf32, #tpu.memory_space<vmem>>, vector<8x32xf32>,
    %c0_40 = arith.constant 0 : index
    %c0_41 = arith.constant 0 : index
    %191 = vector.load %arg8[%c0_40, %c0_41] : memref<8x32xf32, #tpu.memory_space<vmem>>, vector<8x32xf32>
    tpu.vector_store %arg8[%c0_40, %c0_41], %186 {strides = array<i32>} : memref<8x32xf32, #tpu.memory_space<vmem>>, vector<8x32xf32>,
    %c0_i32_42 = arith.constant 0 : i32
    %192 = arith.cmpi eq, %arg1, %c0_i32_42 : i32
    %193 = arith.extui %192 : i1 to i32
    %c0_i32_43 = arith.constant 0 : i32
    %194 = arith.cmpi ne, %193, %c0_i32_43 : i32
    scf.if %194 {
      %195 = arith.truncf %189 : vector<8x32xf32> to vector<8x32xbf16>
      %c0_44 = arith.constant 0 : index
      %c0_45 = arith.constant 0 : index
      %196 = vector.load %arg4[%c0_44, %c0_45] : memref<32x16xbf16, #tpu.memory_space<vmem>>, vector<32x16xbf16>
      %cst_46 = arith.constant dense<0.000000e+00> : vector<8x16xf32>
      %197 = tpu.matmul %195, %196, %cst_46 {dimension_numbers = #tpu.dot_dimension_numbers<[1], [0], [0], [1], [0, 0, 1, 1], [], []>} : vector<8x32xbf16>, vector<32x16xbf16>, vector<8x16xf32> -> vector<8x16xf32>
      %c0_47 = arith.constant 0 : index
      %c0_48 = arith.constant 0 : index
      %198 = vector.load %arg5[%c0_47, %c0_48] : memref<1x16xf32, #tpu.memory_space<vmem>>, vector<1x16xf32>
      %199 = vector.broadcast %198 : vector<1x16xf32> to vector<8x16xf32>
      %200 = arith.addf %197, %199 : vector<8x16xf32>
      %cst_49 = arith.constant 0.000000e+00 : f32
      %201 = vector.broadcast %cst_49 : f32 to vector<8x16xf32>
      %202 = arith.maximumf %200, %201 : vector<8x16xf32>
      %203 = arith.mulf %202, %202 : vector<8x16xf32>
      %cst_50 = arith.constant dense<0.000000e+00> : vector<8xf32>
      %204 = vector.multi_reduction <add>, %203, %cst_50 [1] : vector<8x16xf32> to vector<8xf32>
      %205 = vector.shape_cast %204 : vector<8xf32> to vector<8x1xf32>
      %cst_51 = arith.constant 9.99999996E-13 : f32
      %206 = vector.broadcast %cst_51 : f32 to vector<8x1xf32>
      %207 = arith.addf %205, %206 : vector<8x1xf32>
      %208 = math.rsqrt %207 : vector<8x1xf32>
      %209 = vector.broadcast %208 : vector<8x1xf32> to vector<8x16xf32>
      %210 = arith.mulf %202, %209 : vector<8x16xf32>
      %c0_52 = arith.constant 0 : index
      %c0_53 = arith.constant 0 : index
      %211 = vector.load %arg6[%c0_52, %c0_53] : memref<8x16xf32, #tpu.memory_space<vmem>>, vector<8x16xf32>
      tpu.vector_store %arg6[%c0_52, %c0_53], %210 {strides = array<i32>} : memref<8x16xf32, #tpu.memory_space<vmem>>, vector<8x16xf32>,
    } else {
    }
    return
  }
  func.func @transform_0(%arg0: i32, %arg1: i32) -> (i32, i32, i32) {
    %c0_i32 = arith.constant 0 : i32
    %c0_i32_0 = arith.constant 0 : i32
    return %arg1, %arg0, %c0_i32 : i32, i32, i32
  }
  func.func @transform_1(%arg0: i32, %arg1: i32) -> (i32, i32) {
    %c0_i32 = arith.constant 0 : i32
    %c0_i32_0 = arith.constant 0 : i32
    %c0_i32_1 = arith.constant 0 : i32
    return %c0_i32, %c0_i32_0 : i32, i32
  }
  func.func @transform_2(%arg0: i32, %arg1: i32) -> (i32, i32) {
    %c0_i32 = arith.constant 0 : i32
    %c0_i32_0 = arith.constant 0 : i32
    %c0_i32_1 = arith.constant 0 : i32
    return %c0_i32, %c0_i32_0 : i32, i32
  }
  func.func @transform_3(%arg0: i32, %arg1: i32) -> (i32, i32) {
    %c0_i32 = arith.constant 0 : i32
    %c0_i32_0 = arith.constant 0 : i32
    %c0_i32_1 = arith.constant 0 : i32
    return %c0_i32, %c0_i32_0 : i32, i32
  }
  func.func @transform_4(%arg0: i32, %arg1: i32) -> (i32, i32) {
    %c0_i32 = arith.constant 0 : i32
    %c0_i32_0 = arith.constant 0 : i32
    return %arg0, %c0_i32 : i32, i32
  }
}

module attributes {stable_mosaic.version = 11 : i64} {
  func.func @_lstm_seq_kernel(%arg0: i32, %arg1: i32, %arg2: memref<8x8x128xbf16, #tpu.memory_space<vmem>>, %arg3: memref<32x128xbf16, #tpu.memory_space<vmem>>, %arg4: memref<8x8x32xbf16, #tpu.memory_space<vmem>>, %arg5: memref<8x32xf32, #tpu.memory_space<vmem>>, %arg6: memref<8x32xf32, #tpu.memory_space<vmem>>) attributes {dimension_semantics = [#tpu.dimension_semantics<parallel>, #tpu.dimension_semantics<arbitrary>], iteration_bounds = array<i64: 1, 1>, scalar_prefetch = 0 : i64, scratch_operands = 2 : i64, tpu.core_type = #tpu.core_type<tc>, window_params = [{transform_indices = @transform_0, window_bounds = array<i64: 8, 8, 128>}, {pipeline_mode = #tpu.pipeline_mode<synchronous>, transform_indices = @transform_1, window_bounds = array<i64: 32, 128>}, {transform_indices = @transform_2, window_bounds = array<i64: 8, 8, 32>}]} {
    %c0_i32 = arith.constant 0 : i32
    %0 = arith.cmpi eq, %arg1, %c0_i32 : i32
    %1 = arith.extui %0 : i1 to i32
    %c0_i32_0 = arith.constant 0 : i32
    %2 = arith.cmpi ne, %1, %c0_i32_0 : i32
    scf.if %2 {
      %cst_58 = arith.constant 0.000000e+00 : f32
      %232 = vector.broadcast %cst_58 : f32 to vector<8x32xf32>
      %c0_59 = arith.constant 0 : index
      %c0_60 = arith.constant 0 : index
      %233 = vector.load %arg5[%c0_59, %c0_60] : memref<8x32xf32, #tpu.memory_space<vmem>>, vector<8x32xf32>
      tpu.vector_store %arg5[%c0_59, %c0_60], %232 {strides = array<i32>} : memref<8x32xf32, #tpu.memory_space<vmem>>, vector<8x32xf32>,
      %cst_61 = arith.constant 0.000000e+00 : f32
      %234 = vector.broadcast %cst_61 : f32 to vector<8x32xf32>
      %c0_62 = arith.constant 0 : index
      %c0_63 = arith.constant 0 : index
      %235 = vector.load %arg6[%c0_62, %c0_63] : memref<8x32xf32, #tpu.memory_space<vmem>>, vector<8x32xf32>
      tpu.vector_store %arg6[%c0_62, %c0_63], %234 {strides = array<i32>} : memref<8x32xf32, #tpu.memory_space<vmem>>, vector<8x32xf32>,
    } else {
    }
    %c0 = arith.constant 0 : index
    %c0_1 = arith.constant 0 : index
    %3 = vector.load %arg3[%c0, %c0_1] : memref<32x128xbf16, #tpu.memory_space<vmem>>, vector<32x128xbf16>
    %c0_2 = arith.constant 0 : index
    %c0_3 = arith.constant 0 : index
    %4 = vector.load %arg5[%c0_2, %c0_3] : memref<8x32xf32, #tpu.memory_space<vmem>>, vector<8x32xf32>
    %c0_4 = arith.constant 0 : index
    %c0_5 = arith.constant 0 : index
    %5 = vector.load %arg6[%c0_4, %c0_5] : memref<8x32xf32, #tpu.memory_space<vmem>>, vector<8x32xf32>
    %c0_i32_6 = arith.constant 0 : i32
    %6 = arith.index_cast %c0_i32_6 : i32 to index
    %c0_7 = arith.constant 0 : index
    %c0_8 = arith.constant 0 : index
    %7 = vector.load %arg2[%6, %c0_7, %c0_8] : memref<8x8x128xbf16, #tpu.memory_space<vmem>>, vector<1x8x128xbf16>
    %8 = vector.shape_cast %7 : vector<1x8x128xbf16> to vector<8x128xbf16>
    %9 = arith.extf %8 : vector<8x128xbf16> to vector<8x128xf32>
    %10 = arith.truncf %4 : vector<8x32xf32> to vector<8x32xbf16>
    %cst = arith.constant dense<0.000000e+00> : vector<8x128xf32>
    %11 = tpu.matmul %10, %3, %cst {dimension_numbers = #tpu.dot_dimension_numbers<[1], [0], [0], [1], [0, 0, 1, 1], [], []>} : vector<8x32xbf16>, vector<32x128xbf16>, vector<8x128xf32> -> vector<8x128xf32>
    %12 = arith.addf %9, %11 : vector<8x128xf32>
    %13 = vector.extract_strided_slice %12 {offsets = [0, 0], sizes = [8, 96], strides = [1, 1]} : vector<8x128xf32> to vector<8x96xf32>
    %14 = arith.negf %13 : vector<8x96xf32>
    %15 = math.exp %14 : vector<8x96xf32>
    %cst_9 = arith.constant 1.000000e+00 : f32
    %16 = vector.broadcast %cst_9 : f32 to vector<8x96xf32>
    %17 = arith.addf %16, %15 : vector<8x96xf32>
    %18 = arith.divf %16, %17 : vector<8x96xf32>
    %19 = vector.extract_strided_slice %12 {offsets = [0, 96], sizes = [8, 32], strides = [1, 1]} : vector<8x128xf32> to vector<8x32xf32>
    %20 = math.tanh %19 : vector<8x32xf32>
    %21 = vector.extract_strided_slice %18 {offsets = [0, 32], sizes = [8, 32], strides = [1, 1]} : vector<8x96xf32> to vector<8x32xf32>
    %22 = arith.mulf %21, %5 : vector<8x32xf32>
    %23 = vector.extract_strided_slice %18 {offsets = [0, 0], sizes = [8, 32], strides = [1, 1]} : vector<8x96xf32> to vector<8x32xf32>
    %24 = arith.mulf %23, %20 : vector<8x32xf32>
    %25 = arith.addf %22, %24 : vector<8x32xf32>
    %26 = vector.extract_strided_slice %18 {offsets = [0, 64], sizes = [8, 32], strides = [1, 1]} : vector<8x96xf32> to vector<8x32xf32>
    %27 = math.tanh %25 : vector<8x32xf32>
    %28 = arith.mulf %26, %27 : vector<8x32xf32>
    %29 = arith.truncf %28 : vector<8x32xf32> to vector<8x32xbf16>
    %30 = arith.index_cast %c0_i32_6 : i32 to index
    %c0_10 = arith.constant 0 : index
    %c0_11 = arith.constant 0 : index
    %31 = vector.load %arg4[%30, %c0_10, %c0_11] : memref<8x8x32xbf16, #tpu.memory_space<vmem>>, vector<1x8x32xbf16>
    %32 = vector.shape_cast %31 : vector<1x8x32xbf16> to vector<8x32xbf16>
    %33 = vector.shape_cast %29 : vector<8x32xbf16> to vector<1x8x32xbf16>
    tpu.vector_store %arg4[%30, %c0_10, %c0_11], %33 {strides = array<i32>} : memref<8x8x32xbf16, #tpu.memory_space<vmem>>, vector<1x8x32xbf16>,
    %c1_i32 = arith.constant 1 : i32
    %34 = arith.index_cast %c1_i32 : i32 to index
    %c0_12 = arith.constant 0 : index
    %c0_13 = arith.constant 0 : index
    %35 = vector.load %arg2[%34, %c0_12, %c0_13] : memref<8x8x128xbf16, #tpu.memory_space<vmem>>, vector<1x8x128xbf16>
    %36 = vector.shape_cast %35 : vector<1x8x128xbf16> to vector<8x128xbf16>
    %37 = arith.extf %36 : vector<8x128xbf16> to vector<8x128xf32>
    %38 = arith.truncf %28 : vector<8x32xf32> to vector<8x32xbf16>
    %cst_14 = arith.constant dense<0.000000e+00> : vector<8x128xf32>
    %39 = tpu.matmul %38, %3, %cst_14 {dimension_numbers = #tpu.dot_dimension_numbers<[1], [0], [0], [1], [0, 0, 1, 1], [], []>} : vector<8x32xbf16>, vector<32x128xbf16>, vector<8x128xf32> -> vector<8x128xf32>
    %40 = arith.addf %37, %39 : vector<8x128xf32>
    %41 = vector.extract_strided_slice %40 {offsets = [0, 0], sizes = [8, 96], strides = [1, 1]} : vector<8x128xf32> to vector<8x96xf32>
    %42 = arith.negf %41 : vector<8x96xf32>
    %43 = math.exp %42 : vector<8x96xf32>
    %cst_15 = arith.constant 1.000000e+00 : f32
    %44 = vector.broadcast %cst_15 : f32 to vector<8x96xf32>
    %45 = arith.addf %44, %43 : vector<8x96xf32>
    %46 = arith.divf %44, %45 : vector<8x96xf32>
    %47 = vector.extract_strided_slice %40 {offsets = [0, 96], sizes = [8, 32], strides = [1, 1]} : vector<8x128xf32> to vector<8x32xf32>
    %48 = math.tanh %47 : vector<8x32xf32>
    %49 = vector.extract_strided_slice %46 {offsets = [0, 32], sizes = [8, 32], strides = [1, 1]} : vector<8x96xf32> to vector<8x32xf32>
    %50 = arith.mulf %49, %25 : vector<8x32xf32>
    %51 = vector.extract_strided_slice %46 {offsets = [0, 0], sizes = [8, 32], strides = [1, 1]} : vector<8x96xf32> to vector<8x32xf32>
    %52 = arith.mulf %51, %48 : vector<8x32xf32>
    %53 = arith.addf %50, %52 : vector<8x32xf32>
    %54 = vector.extract_strided_slice %46 {offsets = [0, 64], sizes = [8, 32], strides = [1, 1]} : vector<8x96xf32> to vector<8x32xf32>
    %55 = math.tanh %53 : vector<8x32xf32>
    %56 = arith.mulf %54, %55 : vector<8x32xf32>
    %57 = arith.truncf %56 : vector<8x32xf32> to vector<8x32xbf16>
    %58 = arith.index_cast %c1_i32 : i32 to index
    %c0_16 = arith.constant 0 : index
    %c0_17 = arith.constant 0 : index
    %59 = vector.load %arg4[%58, %c0_16, %c0_17] : memref<8x8x32xbf16, #tpu.memory_space<vmem>>, vector<1x8x32xbf16>
    %60 = vector.shape_cast %59 : vector<1x8x32xbf16> to vector<8x32xbf16>
    %61 = vector.shape_cast %57 : vector<8x32xbf16> to vector<1x8x32xbf16>
    tpu.vector_store %arg4[%58, %c0_16, %c0_17], %61 {strides = array<i32>} : memref<8x8x32xbf16, #tpu.memory_space<vmem>>, vector<1x8x32xbf16>,
    %c2_i32 = arith.constant 2 : i32
    %62 = arith.index_cast %c2_i32 : i32 to index
    %c0_18 = arith.constant 0 : index
    %c0_19 = arith.constant 0 : index
    %63 = vector.load %arg2[%62, %c0_18, %c0_19] : memref<8x8x128xbf16, #tpu.memory_space<vmem>>, vector<1x8x128xbf16>
    %64 = vector.shape_cast %63 : vector<1x8x128xbf16> to vector<8x128xbf16>
    %65 = arith.extf %64 : vector<8x128xbf16> to vector<8x128xf32>
    %66 = arith.truncf %56 : vector<8x32xf32> to vector<8x32xbf16>
    %cst_20 = arith.constant dense<0.000000e+00> : vector<8x128xf32>
    %67 = tpu.matmul %66, %3, %cst_20 {dimension_numbers = #tpu.dot_dimension_numbers<[1], [0], [0], [1], [0, 0, 1, 1], [], []>} : vector<8x32xbf16>, vector<32x128xbf16>, vector<8x128xf32> -> vector<8x128xf32>
    %68 = arith.addf %65, %67 : vector<8x128xf32>
    %69 = vector.extract_strided_slice %68 {offsets = [0, 0], sizes = [8, 96], strides = [1, 1]} : vector<8x128xf32> to vector<8x96xf32>
    %70 = arith.negf %69 : vector<8x96xf32>
    %71 = math.exp %70 : vector<8x96xf32>
    %cst_21 = arith.constant 1.000000e+00 : f32
    %72 = vector.broadcast %cst_21 : f32 to vector<8x96xf32>
    %73 = arith.addf %72, %71 : vector<8x96xf32>
    %74 = arith.divf %72, %73 : vector<8x96xf32>
    %75 = vector.extract_strided_slice %68 {offsets = [0, 96], sizes = [8, 32], strides = [1, 1]} : vector<8x128xf32> to vector<8x32xf32>
    %76 = math.tanh %75 : vector<8x32xf32>
    %77 = vector.extract_strided_slice %74 {offsets = [0, 32], sizes = [8, 32], strides = [1, 1]} : vector<8x96xf32> to vector<8x32xf32>
    %78 = arith.mulf %77, %53 : vector<8x32xf32>
    %79 = vector.extract_strided_slice %74 {offsets = [0, 0], sizes = [8, 32], strides = [1, 1]} : vector<8x96xf32> to vector<8x32xf32>
    %80 = arith.mulf %79, %76 : vector<8x32xf32>
    %81 = arith.addf %78, %80 : vector<8x32xf32>
    %82 = vector.extract_strided_slice %74 {offsets = [0, 64], sizes = [8, 32], strides = [1, 1]} : vector<8x96xf32> to vector<8x32xf32>
    %83 = math.tanh %81 : vector<8x32xf32>
    %84 = arith.mulf %82, %83 : vector<8x32xf32>
    %85 = arith.truncf %84 : vector<8x32xf32> to vector<8x32xbf16>
    %86 = arith.index_cast %c2_i32 : i32 to index
    %c0_22 = arith.constant 0 : index
    %c0_23 = arith.constant 0 : index
    %87 = vector.load %arg4[%86, %c0_22, %c0_23] : memref<8x8x32xbf16, #tpu.memory_space<vmem>>, vector<1x8x32xbf16>
    %88 = vector.shape_cast %87 : vector<1x8x32xbf16> to vector<8x32xbf16>
    %89 = vector.shape_cast %85 : vector<8x32xbf16> to vector<1x8x32xbf16>
    tpu.vector_store %arg4[%86, %c0_22, %c0_23], %89 {strides = array<i32>} : memref<8x8x32xbf16, #tpu.memory_space<vmem>>, vector<1x8x32xbf16>,
    %c3_i32 = arith.constant 3 : i32
    %90 = arith.index_cast %c3_i32 : i32 to index
    %c0_24 = arith.constant 0 : index
    %c0_25 = arith.constant 0 : index
    %91 = vector.load %arg2[%90, %c0_24, %c0_25] : memref<8x8x128xbf16, #tpu.memory_space<vmem>>, vector<1x8x128xbf16>
    %92 = vector.shape_cast %91 : vector<1x8x128xbf16> to vector<8x128xbf16>
    %93 = arith.extf %92 : vector<8x128xbf16> to vector<8x128xf32>
    %94 = arith.truncf %84 : vector<8x32xf32> to vector<8x32xbf16>
    %cst_26 = arith.constant dense<0.000000e+00> : vector<8x128xf32>
    %95 = tpu.matmul %94, %3, %cst_26 {dimension_numbers = #tpu.dot_dimension_numbers<[1], [0], [0], [1], [0, 0, 1, 1], [], []>} : vector<8x32xbf16>, vector<32x128xbf16>, vector<8x128xf32> -> vector<8x128xf32>
    %96 = arith.addf %93, %95 : vector<8x128xf32>
    %97 = vector.extract_strided_slice %96 {offsets = [0, 0], sizes = [8, 96], strides = [1, 1]} : vector<8x128xf32> to vector<8x96xf32>
    %98 = arith.negf %97 : vector<8x96xf32>
    %99 = math.exp %98 : vector<8x96xf32>
    %cst_27 = arith.constant 1.000000e+00 : f32
    %100 = vector.broadcast %cst_27 : f32 to vector<8x96xf32>
    %101 = arith.addf %100, %99 : vector<8x96xf32>
    %102 = arith.divf %100, %101 : vector<8x96xf32>
    %103 = vector.extract_strided_slice %96 {offsets = [0, 96], sizes = [8, 32], strides = [1, 1]} : vector<8x128xf32> to vector<8x32xf32>
    %104 = math.tanh %103 : vector<8x32xf32>
    %105 = vector.extract_strided_slice %102 {offsets = [0, 32], sizes = [8, 32], strides = [1, 1]} : vector<8x96xf32> to vector<8x32xf32>
    %106 = arith.mulf %105, %81 : vector<8x32xf32>
    %107 = vector.extract_strided_slice %102 {offsets = [0, 0], sizes = [8, 32], strides = [1, 1]} : vector<8x96xf32> to vector<8x32xf32>
    %108 = arith.mulf %107, %104 : vector<8x32xf32>
    %109 = arith.addf %106, %108 : vector<8x32xf32>
    %110 = vector.extract_strided_slice %102 {offsets = [0, 64], sizes = [8, 32], strides = [1, 1]} : vector<8x96xf32> to vector<8x32xf32>
    %111 = math.tanh %109 : vector<8x32xf32>
    %112 = arith.mulf %110, %111 : vector<8x32xf32>
    %113 = arith.truncf %112 : vector<8x32xf32> to vector<8x32xbf16>
    %114 = arith.index_cast %c3_i32 : i32 to index
    %c0_28 = arith.constant 0 : index
    %c0_29 = arith.constant 0 : index
    %115 = vector.load %arg4[%114, %c0_28, %c0_29] : memref<8x8x32xbf16, #tpu.memory_space<vmem>>, vector<1x8x32xbf16>
    %116 = vector.shape_cast %115 : vector<1x8x32xbf16> to vector<8x32xbf16>
    %117 = vector.shape_cast %113 : vector<8x32xbf16> to vector<1x8x32xbf16>
    tpu.vector_store %arg4[%114, %c0_28, %c0_29], %117 {strides = array<i32>} : memref<8x8x32xbf16, #tpu.memory_space<vmem>>, vector<1x8x32xbf16>,
    %c4_i32 = arith.constant 4 : i32
    %118 = arith.index_cast %c4_i32 : i32 to index
    %c0_30 = arith.constant 0 : index
    %c0_31 = arith.constant 0 : index
    %119 = vector.load %arg2[%118, %c0_30, %c0_31] : memref<8x8x128xbf16, #tpu.memory_space<vmem>>, vector<1x8x128xbf16>
    %120 = vector.shape_cast %119 : vector<1x8x128xbf16> to vector<8x128xbf16>
    %121 = arith.extf %120 : vector<8x128xbf16> to vector<8x128xf32>
    %122 = arith.truncf %112 : vector<8x32xf32> to vector<8x32xbf16>
    %cst_32 = arith.constant dense<0.000000e+00> : vector<8x128xf32>
    %123 = tpu.matmul %122, %3, %cst_32 {dimension_numbers = #tpu.dot_dimension_numbers<[1], [0], [0], [1], [0, 0, 1, 1], [], []>} : vector<8x32xbf16>, vector<32x128xbf16>, vector<8x128xf32> -> vector<8x128xf32>
    %124 = arith.addf %121, %123 : vector<8x128xf32>
    %125 = vector.extract_strided_slice %124 {offsets = [0, 0], sizes = [8, 96], strides = [1, 1]} : vector<8x128xf32> to vector<8x96xf32>
    %126 = arith.negf %125 : vector<8x96xf32>
    %127 = math.exp %126 : vector<8x96xf32>
    %cst_33 = arith.constant 1.000000e+00 : f32
    %128 = vector.broadcast %cst_33 : f32 to vector<8x96xf32>
    %129 = arith.addf %128, %127 : vector<8x96xf32>
    %130 = arith.divf %128, %129 : vector<8x96xf32>
    %131 = vector.extract_strided_slice %124 {offsets = [0, 96], sizes = [8, 32], strides = [1, 1]} : vector<8x128xf32> to vector<8x32xf32>
    %132 = math.tanh %131 : vector<8x32xf32>
    %133 = vector.extract_strided_slice %130 {offsets = [0, 32], sizes = [8, 32], strides = [1, 1]} : vector<8x96xf32> to vector<8x32xf32>
    %134 = arith.mulf %133, %109 : vector<8x32xf32>
    %135 = vector.extract_strided_slice %130 {offsets = [0, 0], sizes = [8, 32], strides = [1, 1]} : vector<8x96xf32> to vector<8x32xf32>
    %136 = arith.mulf %135, %132 : vector<8x32xf32>
    %137 = arith.addf %134, %136 : vector<8x32xf32>
    %138 = vector.extract_strided_slice %130 {offsets = [0, 64], sizes = [8, 32], strides = [1, 1]} : vector<8x96xf32> to vector<8x32xf32>
    %139 = math.tanh %137 : vector<8x32xf32>
    %140 = arith.mulf %138, %139 : vector<8x32xf32>
    %141 = arith.truncf %140 : vector<8x32xf32> to vector<8x32xbf16>
    %142 = arith.index_cast %c4_i32 : i32 to index
    %c0_34 = arith.constant 0 : index
    %c0_35 = arith.constant 0 : index
    %143 = vector.load %arg4[%142, %c0_34, %c0_35] : memref<8x8x32xbf16, #tpu.memory_space<vmem>>, vector<1x8x32xbf16>
    %144 = vector.shape_cast %143 : vector<1x8x32xbf16> to vector<8x32xbf16>
    %145 = vector.shape_cast %141 : vector<8x32xbf16> to vector<1x8x32xbf16>
    tpu.vector_store %arg4[%142, %c0_34, %c0_35], %145 {strides = array<i32>} : memref<8x8x32xbf16, #tpu.memory_space<vmem>>, vector<1x8x32xbf16>,
    %c5_i32 = arith.constant 5 : i32
    %146 = arith.index_cast %c5_i32 : i32 to index
    %c0_36 = arith.constant 0 : index
    %c0_37 = arith.constant 0 : index
    %147 = vector.load %arg2[%146, %c0_36, %c0_37] : memref<8x8x128xbf16, #tpu.memory_space<vmem>>, vector<1x8x128xbf16>
    %148 = vector.shape_cast %147 : vector<1x8x128xbf16> to vector<8x128xbf16>
    %149 = arith.extf %148 : vector<8x128xbf16> to vector<8x128xf32>
    %150 = arith.truncf %140 : vector<8x32xf32> to vector<8x32xbf16>
    %cst_38 = arith.constant dense<0.000000e+00> : vector<8x128xf32>
    %151 = tpu.matmul %150, %3, %cst_38 {dimension_numbers = #tpu.dot_dimension_numbers<[1], [0], [0], [1], [0, 0, 1, 1], [], []>} : vector<8x32xbf16>, vector<32x128xbf16>, vector<8x128xf32> -> vector<8x128xf32>
    %152 = arith.addf %149, %151 : vector<8x128xf32>
    %153 = vector.extract_strided_slice %152 {offsets = [0, 0], sizes = [8, 96], strides = [1, 1]} : vector<8x128xf32> to vector<8x96xf32>
    %154 = arith.negf %153 : vector<8x96xf32>
    %155 = math.exp %154 : vector<8x96xf32>
    %cst_39 = arith.constant 1.000000e+00 : f32
    %156 = vector.broadcast %cst_39 : f32 to vector<8x96xf32>
    %157 = arith.addf %156, %155 : vector<8x96xf32>
    %158 = arith.divf %156, %157 : vector<8x96xf32>
    %159 = vector.extract_strided_slice %152 {offsets = [0, 96], sizes = [8, 32], strides = [1, 1]} : vector<8x128xf32> to vector<8x32xf32>
    %160 = math.tanh %159 : vector<8x32xf32>
    %161 = vector.extract_strided_slice %158 {offsets = [0, 32], sizes = [8, 32], strides = [1, 1]} : vector<8x96xf32> to vector<8x32xf32>
    %162 = arith.mulf %161, %137 : vector<8x32xf32>
    %163 = vector.extract_strided_slice %158 {offsets = [0, 0], sizes = [8, 32], strides = [1, 1]} : vector<8x96xf32> to vector<8x32xf32>
    %164 = arith.mulf %163, %160 : vector<8x32xf32>
    %165 = arith.addf %162, %164 : vector<8x32xf32>
    %166 = vector.extract_strided_slice %158 {offsets = [0, 64], sizes = [8, 32], strides = [1, 1]} : vector<8x96xf32> to vector<8x32xf32>
    %167 = math.tanh %165 : vector<8x32xf32>
    %168 = arith.mulf %166, %167 : vector<8x32xf32>
    %169 = arith.truncf %168 : vector<8x32xf32> to vector<8x32xbf16>
    %170 = arith.index_cast %c5_i32 : i32 to index
    %c0_40 = arith.constant 0 : index
    %c0_41 = arith.constant 0 : index
    %171 = vector.load %arg4[%170, %c0_40, %c0_41] : memref<8x8x32xbf16, #tpu.memory_space<vmem>>, vector<1x8x32xbf16>
    %172 = vector.shape_cast %171 : vector<1x8x32xbf16> to vector<8x32xbf16>
    %173 = vector.shape_cast %169 : vector<8x32xbf16> to vector<1x8x32xbf16>
    tpu.vector_store %arg4[%170, %c0_40, %c0_41], %173 {strides = array<i32>} : memref<8x8x32xbf16, #tpu.memory_space<vmem>>, vector<1x8x32xbf16>,
    %c6_i32 = arith.constant 6 : i32
    %174 = arith.index_cast %c6_i32 : i32 to index
    %c0_42 = arith.constant 0 : index
    %c0_43 = arith.constant 0 : index
    %175 = vector.load %arg2[%174, %c0_42, %c0_43] : memref<8x8x128xbf16, #tpu.memory_space<vmem>>, vector<1x8x128xbf16>
    %176 = vector.shape_cast %175 : vector<1x8x128xbf16> to vector<8x128xbf16>
    %177 = arith.extf %176 : vector<8x128xbf16> to vector<8x128xf32>
    %178 = arith.truncf %168 : vector<8x32xf32> to vector<8x32xbf16>
    %cst_44 = arith.constant dense<0.000000e+00> : vector<8x128xf32>
    %179 = tpu.matmul %178, %3, %cst_44 {dimension_numbers = #tpu.dot_dimension_numbers<[1], [0], [0], [1], [0, 0, 1, 1], [], []>} : vector<8x32xbf16>, vector<32x128xbf16>, vector<8x128xf32> -> vector<8x128xf32>
    %180 = arith.addf %177, %179 : vector<8x128xf32>
    %181 = vector.extract_strided_slice %180 {offsets = [0, 0], sizes = [8, 96], strides = [1, 1]} : vector<8x128xf32> to vector<8x96xf32>
    %182 = arith.negf %181 : vector<8x96xf32>
    %183 = math.exp %182 : vector<8x96xf32>
    %cst_45 = arith.constant 1.000000e+00 : f32
    %184 = vector.broadcast %cst_45 : f32 to vector<8x96xf32>
    %185 = arith.addf %184, %183 : vector<8x96xf32>
    %186 = arith.divf %184, %185 : vector<8x96xf32>
    %187 = vector.extract_strided_slice %180 {offsets = [0, 96], sizes = [8, 32], strides = [1, 1]} : vector<8x128xf32> to vector<8x32xf32>
    %188 = math.tanh %187 : vector<8x32xf32>
    %189 = vector.extract_strided_slice %186 {offsets = [0, 32], sizes = [8, 32], strides = [1, 1]} : vector<8x96xf32> to vector<8x32xf32>
    %190 = arith.mulf %189, %165 : vector<8x32xf32>
    %191 = vector.extract_strided_slice %186 {offsets = [0, 0], sizes = [8, 32], strides = [1, 1]} : vector<8x96xf32> to vector<8x32xf32>
    %192 = arith.mulf %191, %188 : vector<8x32xf32>
    %193 = arith.addf %190, %192 : vector<8x32xf32>
    %194 = vector.extract_strided_slice %186 {offsets = [0, 64], sizes = [8, 32], strides = [1, 1]} : vector<8x96xf32> to vector<8x32xf32>
    %195 = math.tanh %193 : vector<8x32xf32>
    %196 = arith.mulf %194, %195 : vector<8x32xf32>
    %197 = arith.truncf %196 : vector<8x32xf32> to vector<8x32xbf16>
    %198 = arith.index_cast %c6_i32 : i32 to index
    %c0_46 = arith.constant 0 : index
    %c0_47 = arith.constant 0 : index
    %199 = vector.load %arg4[%198, %c0_46, %c0_47] : memref<8x8x32xbf16, #tpu.memory_space<vmem>>, vector<1x8x32xbf16>
    %200 = vector.shape_cast %199 : vector<1x8x32xbf16> to vector<8x32xbf16>
    %201 = vector.shape_cast %197 : vector<8x32xbf16> to vector<1x8x32xbf16>
    tpu.vector_store %arg4[%198, %c0_46, %c0_47], %201 {strides = array<i32>} : memref<8x8x32xbf16, #tpu.memory_space<vmem>>, vector<1x8x32xbf16>,
    %c7_i32 = arith.constant 7 : i32
    %202 = arith.index_cast %c7_i32 : i32 to index
    %c0_48 = arith.constant 0 : index
    %c0_49 = arith.constant 0 : index
    %203 = vector.load %arg2[%202, %c0_48, %c0_49] : memref<8x8x128xbf16, #tpu.memory_space<vmem>>, vector<1x8x128xbf16>
    %204 = vector.shape_cast %203 : vector<1x8x128xbf16> to vector<8x128xbf16>
    %205 = arith.extf %204 : vector<8x128xbf16> to vector<8x128xf32>
    %206 = arith.truncf %196 : vector<8x32xf32> to vector<8x32xbf16>
    %cst_50 = arith.constant dense<0.000000e+00> : vector<8x128xf32>
    %207 = tpu.matmul %206, %3, %cst_50 {dimension_numbers = #tpu.dot_dimension_numbers<[1], [0], [0], [1], [0, 0, 1, 1], [], []>} : vector<8x32xbf16>, vector<32x128xbf16>, vector<8x128xf32> -> vector<8x128xf32>
    %208 = arith.addf %205, %207 : vector<8x128xf32>
    %209 = vector.extract_strided_slice %208 {offsets = [0, 0], sizes = [8, 96], strides = [1, 1]} : vector<8x128xf32> to vector<8x96xf32>
    %210 = arith.negf %209 : vector<8x96xf32>
    %211 = math.exp %210 : vector<8x96xf32>
    %cst_51 = arith.constant 1.000000e+00 : f32
    %212 = vector.broadcast %cst_51 : f32 to vector<8x96xf32>
    %213 = arith.addf %212, %211 : vector<8x96xf32>
    %214 = arith.divf %212, %213 : vector<8x96xf32>
    %215 = vector.extract_strided_slice %208 {offsets = [0, 96], sizes = [8, 32], strides = [1, 1]} : vector<8x128xf32> to vector<8x32xf32>
    %216 = math.tanh %215 : vector<8x32xf32>
    %217 = vector.extract_strided_slice %214 {offsets = [0, 32], sizes = [8, 32], strides = [1, 1]} : vector<8x96xf32> to vector<8x32xf32>
    %218 = arith.mulf %217, %193 : vector<8x32xf32>
    %219 = vector.extract_strided_slice %214 {offsets = [0, 0], sizes = [8, 32], strides = [1, 1]} : vector<8x96xf32> to vector<8x32xf32>
    %220 = arith.mulf %219, %216 : vector<8x32xf32>
    %221 = arith.addf %218, %220 : vector<8x32xf32>
    %222 = vector.extract_strided_slice %214 {offsets = [0, 64], sizes = [8, 32], strides = [1, 1]} : vector<8x96xf32> to vector<8x32xf32>
    %223 = math.tanh %221 : vector<8x32xf32>
    %224 = arith.mulf %222, %223 : vector<8x32xf32>
    %225 = arith.truncf %224 : vector<8x32xf32> to vector<8x32xbf16>
    %226 = arith.index_cast %c7_i32 : i32 to index
    %c0_52 = arith.constant 0 : index
    %c0_53 = arith.constant 0 : index
    %227 = vector.load %arg4[%226, %c0_52, %c0_53] : memref<8x8x32xbf16, #tpu.memory_space<vmem>>, vector<1x8x32xbf16>
    %228 = vector.shape_cast %227 : vector<1x8x32xbf16> to vector<8x32xbf16>
    %229 = vector.shape_cast %225 : vector<8x32xbf16> to vector<1x8x32xbf16>
    tpu.vector_store %arg4[%226, %c0_52, %c0_53], %229 {strides = array<i32>} : memref<8x8x32xbf16, #tpu.memory_space<vmem>>, vector<1x8x32xbf16>,
    %c8_i32 = arith.constant 8 : i32
    %c0_54 = arith.constant 0 : index
    %c0_55 = arith.constant 0 : index
    %230 = vector.load %arg5[%c0_54, %c0_55] : memref<8x32xf32, #tpu.memory_space<vmem>>, vector<8x32xf32>
    tpu.vector_store %arg5[%c0_54, %c0_55], %224 {strides = array<i32>} : memref<8x32xf32, #tpu.memory_space<vmem>>, vector<8x32xf32>,
    %c0_56 = arith.constant 0 : index
    %c0_57 = arith.constant 0 : index
    %231 = vector.load %arg6[%c0_56, %c0_57] : memref<8x32xf32, #tpu.memory_space<vmem>>, vector<8x32xf32>
    tpu.vector_store %arg6[%c0_56, %c0_57], %221 {strides = array<i32>} : memref<8x32xf32, #tpu.memory_space<vmem>>, vector<8x32xf32>,
    return
  }
  func.func @transform_0(%arg0: i32, %arg1: i32) -> (i32, i32, i32) {
    %c0_i32 = arith.constant 0 : i32
    %c0_i32_0 = arith.constant 0 : i32
    return %arg1, %arg0, %c0_i32 : i32, i32, i32
  }
  func.func @transform_1(%arg0: i32, %arg1: i32) -> (i32, i32) {
    %c0_i32 = arith.constant 0 : i32
    %c0_i32_0 = arith.constant 0 : i32
    %c0_i32_1 = arith.constant 0 : i32
    return %c0_i32, %c0_i32_0 : i32, i32
  }
  func.func @transform_2(%arg0: i32, %arg1: i32) -> (i32, i32, i32) {
    %c0_i32 = arith.constant 0 : i32
    %c0_i32_0 = arith.constant 0 : i32
    return %arg1, %arg0, %c0_i32 : i32, i32, i32
  }
}

</mosaic_0001>

<bundles_post_ra>
// kernel: speaker_encoder_forward.4
= control target key start
LH: loop header
LB: loop body
LE: loop exit
PB: predicated region body
PF: predicated region fallthrough
CT: control target
= control target key end

     0   :  { %vm58_vm0 = vcmask 130048   ;;  %s301_s1 = inlined_call_operand.vmem [shape: bf16[16,128], index: 1, kind: input, shape index: {}]   ;;  %s302_s0 = inlined_call_operand.vmem [shape: bf16[64,16], index: 0, kind: input, shape index: {}]   ;;  %s303_s2 = inlined_call_operand.vmem [shape: f32[1,128], index: 2, kind: input, shape index: {}]   ;;  %s304_s3 = inlined_call_operand.vmem [shape: bf16[64,128], index: 3, kind: output, shape index: {}]  }
   0x1   :  { %v246_v0 = vld [vmem:[%s301_s1] sm:$0xff]   ;;  %v248_v2 = vld [vmem:[%s302_s0 + $0x10] sm:$0xff]   ;;  %v249_v3 = vld [vmem:[%s302_s0 + $0x8] sm:$0xff]  }
   0x2   :  { %v247_v1 = vld [vmem:[%s302_s0] sm:$0xff]   ;;  %234 = vmatprep.subr.bf16.mxu0 %v246_v0  ;;  %244 = vmatprep.subr.bf16.mxu1 %v246_v0  ;;  %v250_v4 = vld [vmem:[%s302_s0 + $0x18] sm:$0xff]  }
   0x3   :  { %235 = vmatpush3.bf16.msra.mxu0 %v246_v0  ;;  %245 = vmatpush3.bf16.msra.mxu1 %v246_v0  ;;  %v180_v7 = vld [vmem:[%s303_s2] ss:$0 sm:$0xff] }
   0x4   :  { %236 = vmatprep.mubr.msk.bf16.mxu0 %vm58_vm0, %v247_v1  ;;  %240 = vmatprep.mubr.msk.bf16.mxu1 %vm58_vm0, %v248_v2 }
   0x6   :  { %237 = vmatmul.mubr.msk.bf16.vlgmr.msra.gmra.mxu0 %vm58_vm0, %v249_v3  ;;  %241 = vmatmul.mubr.msk.bf16.vlgmr.msra.gmra.mxu1 %vm58_vm0, %v250_v4 }
  0xc6   :  { %v238_v5 = vpop.f32.mrf.mxu0  ;;  %v242_v6 = vpop.f32.mrf.mxu1 }
  0xc7   :  { %v114_v12 = vadd.f32 %v238_v5, %v180_v7  ;;  %v130_v13 = vadd.f32 %v242_v6, %v180_v7 }
  0xc8   :  { %v105_v8 = vpop.f32.mrf.mxu0  ;;  %v121_v9 = vpop.f32.mrf.mxu1 }
  0xc9   :  { %v106_v16 = vadd.f32 %v180_v7, %v105_v8  ;;  %v122_v17 = vadd.f32 %v180_v7, %v121_v9 }
  0xca   :  { %v239_v10 = vpop.f32.mrf.mxu0  ;;  %v243_v11 = vpop.f32.mrf.mxu1 }
  0xcb   :  { %v117_v14 = vadd.f32 %v239_v10, %v180_v7  ;;  %v133_v15 = vadd.f32 %v243_v11, %v180_v7 }
  0xcc   :  { %v108_v18 = vpop.f32.mrf.mxu0  ;;  %v124_v19 = vpop.f32.mrf.mxu1 }
  0xcd   :  { %v214_v20 = vpack.c.bf16 %v117_v14, %v114_v12  ;;  %v224_v21 = vpack.c.bf16 %v133_v15, %v130_v13  ;;  %v109_v22 = vadd.f32 %v180_v7, %v108_v18  ;;  %v125_v23 = vadd.f32 %v180_v7, %v124_v19 }
  0xcf   :  { %226 = vst [vmem:[%s304_s3 + $0x8] sm:$0xff] %v214_v20   ;;  %228 = vst [vmem:[%s304_s3 + $0x18] sm:$0xff] %v224_v21   ;;  %v209_v24 = vpack.c.bf16 %v109_v22, %v106_v16  ;;  %v219_v25 = vpack.c.bf16 %v125_v23, %v122_v17 }
  0xd1   :  { %210 = vst [vmem:[%s304_s3] sm:$0xff] %v209_v24   ;;  %227 = vst [vmem:[%s304_s3 + $0x10] sm:$0xff] %v219_v25  }

// kernel: speaker_encoder_forward.6
= control target key start
LH: loop header
LB: loop body
LE: loop exit
PB: predicated region body
PF: predicated region fallthrough
CT: control target
= control target key end

     0   :  { %vm66_vm0 = vcmask 261120   ;;  %s319_s1 = inlined_call_operand.vmem [shape: bf16[32,128], index: 1, kind: input, shape index: {}]   ;;  %s320_s0 = inlined_call_operand.vmem [shape: bf16[64,32], index: 0, kind: input, shape index: {}]   ;;  %s321_s2 = inlined_call_operand.vmem [shape: f32[1,128], index: 2, kind: input, shape index: {}]   ;;  %s322_s3 = inlined_call_operand.vmem [shape: bf16[64,128], index: 3, kind: output, shape index: {}]  }
   0x1   :  { %v260_v0 = vld [vmem:[%s319_s1 + $0x8] sm:$0xff]   ;;  %v261_v1 = vld [vmem:[%s319_s1] sm:$0xff]   ;;  %v263_v3 = vld [vmem:[%s320_s0 + $0x10] sm:$0xff]  }
   0x2   :  { %244 = vmatprep.subr.bf16.mxu0 %v260_v0  ;;  %256 = vmatprep.subr.bf16.mxu1 %v260_v0  ;;  %v262_v2 = vld [vmem:[%s320_s0] sm:$0xff]   ;;  %v264_v4 = vld [vmem:[%s320_s0 + $0x8] sm:$0xff]   ;;  %v265_v5 = vld [vmem:[%s320_s0 + $0x18] sm:$0xff]  }
   0x3   :  { %245 = vmatpush3.bf16.msra.mxu0 %v260_v0  ;;  %258 = vmatpush3.bf16.msra.mxu1 %v260_v0  ;;  %v188_v8 = vld [vmem:[%s321_s2] ss:$0 sm:$0xff] }
   0x4   :  { %246 = vmatprep.subr.bf16.mxu0 %v261_v1  ;;  %257 = vmatprep.subr.bf16.mxu1 %v261_v1 }
   0x5   :  { %248 = vmatprep.mubr.msk.bf16.mxu0 %vm66_vm0, %v262_v2  ;;  %252 = vmatprep.mubr.msk.bf16.mxu1 %vm66_vm0, %v263_v3 }
   0x7   :  { %247 = vmatpush3.bf16.msra.mxu0 %v261_v1  ;;  %259 = vmatpush3.bf16.msra.mxu1 %v261_v1 }
   0xa   :  { %249 = vmatmul.mubr.msk.bf16.vlgmr.msra.gmra.mxu0 %vm66_vm0, %v264_v4  ;;  %253 = vmatmul.mubr.msk.bf16.vlgmr.msra.gmra.mxu1 %vm66_vm0, %v265_v5 }
  0xca   :  { %v250_v6 = vpop.f32.mrf.mxu0  ;;  %v254_v7 = vpop.f32.mrf.mxu1 }
  0xcb   :  { %v122_v13 = vadd.f32 %v250_v6, %v188_v8  ;;  %v138_v14 = vadd.f32 %v254_v7, %v188_v8 }
  0xcc   :  { %v113_v9 = vpop.f32.mrf.mxu0  ;;  %v129_v10 = vpop.f32.mrf.mxu1 }
  0xcd   :  { %v114_v17 = vadd.f32 %v188_v8, %v113_v9  ;;  %v130_v18 = vadd.f32 %v188_v8, %v129_v10 }
  0xce   :  { %v251_v11 = vpop.f32.mrf.mxu0  ;;  %v255_v12 = vpop.f32.mrf.mxu1 }
  0xcf   :  { %v125_v15 = vadd.f32 %v251_v11, %v188_v8  ;;  %v141_v16 = vadd.f32 %v255_v12, %v188_v8 }
  0xd0   :  { %v116_v19 = vpop.f32.mrf.mxu0  ;;  %v132_v20 = vpop.f32.mrf.mxu1 }
  0xd1   :  { %v223_v21 = vpack.c.bf16 %v125_v15, %v122_v13  ;;  %v233_v22 = vpack.c.bf16 %v141_v16, %v138_v14  ;;  %v117_v23 = vadd.f32 %v188_v8, %v116_v19  ;;  %v133_v24 = vadd.f32 %v188_v8, %v132_v20 }
  0xd3   :  { %235 = vst [vmem:[%s322_s3 + $0x8] sm:$0xff] %v223_v21   ;;  %237 = vst [vmem:[%s322_s3 + $0x18] sm:$0xff] %v233_v22   ;;  %v218_v25 = vpack.c.bf16 %v117_v23, %v114_v17  ;;  %v228_v26 = vpack.c.bf16 %v133_v24, %v130_v18 }
  0xd5   :  { %219 = vst [vmem:[%s322_s3] sm:$0xff] %v218_v25   ;;  %236 = vst [vmem:[%s322_s3 + $0x10] sm:$0xff] %v228_v26  }

// kernel: speaker_encoder_forward.5
= control target key start
LH: loop header
LB: loop body
LE: loop exit
PB: predicated region body
PF: predicated region fallthrough
CT: control target
= control target key end

     0   :  { %vm16_vm0 = vcmask 261120   ;;  %v917_v0 = vmov 0.0   ;;  %vm918_vm1 = vmmov 0   ;;  %s919_s14 = smov 32   ;;  %s920_s15 = smov 64   ;;  %vm120_vm2 = vcmask 257024   ;;  %s1118_s1 = inlined_call_operand.vmem [shape: bf16[32,128], index: 1, kind: input, shape index: {}]   ;;  %s1119_s0 = inlined_call_operand.vmem [shape: bf16[8,8,128], index: 0, kind: input, shape index: {}]   ;;  %s1120_s2 = inlined_call_operand.vmem [shape: bf16[8,8,32], index: 2, kind: output, shape index: {}]  }
   0x1   :  { %782 = vmatprep.subr.bf16.mxu0 %v917_v0  ;;  %v941_v1 = vld [vmem:[%s1118_s1 + $0x8] sm:$0xff]   ;;  %786 = vmatprep.mubr.msk.bf16.mxu0 %vm918_vm1, %v917_v0  ;;  %17 = vst.msk [vmem:[#allocation2] sm:$0xff] %vm16_vm0, %v917_v0  ;;  %18 = vst.msk [vmem:[#allocation3] sm:$0xff] %vm16_vm0, %v917_v0  ;;  %v956_v2 = vld [vmem:[%s1118_s1] sm:$0xff]   ;;  %s921_s5 = smov 96  }
   0x2   :  { %790 = vmatprep.subr.bf16.mxu1 %v917_v0  ;;  %794 = vmatprep.mubr.msk.bf16.mxu1 %vm918_vm1, %v917_v0  ;;  %v25_v5 = vld [vmem:[%s1119_s0] sm:$0xff]   ;;  %v720_v50 = vld [vmem:[%s1119_s0 + $0x8] sm:$0xff]  }
   0x3   :  { %783 = vmatpush3.bf16.msra.mxu0 %v941_v1  ;;  %791 = vmatpush3.bf16.msra.mxu1 %v941_v1  ;;  %v26_v6 = vunpack.c.l.bf16 %v25_v5  ;;  %v124_v29 = vunpack.c.h.bf16 %v25_v5  ;;  %v206_v51 = vunpack.c.l.bf16 %v720_v50 }
   0x4   :  { %784 = vmatprep.subr.bf16.mxu0 %v917_v0  ;;  %792 = vmatprep.subr.bf16.mxu1 %v917_v0 }
   0x7   :  { %785 = vmatpush3.bf16.msra.mxu0 %v956_v2  ;;  %793 = vmatpush3.bf16.msra.mxu1 %v956_v2 }
   0x8   :  { %v23_v3 = vld [vmem:[#allocation2] sm:$0xff]  ;;  %798 = vmatprep.subr.bf16.mxu0 %v917_v0  ;;  %806 = vmatprep.subr.bf16.mxu1 %v917_v0  ;;  %v24_v13 = vld [vmem:[#allocation3] sm:$0xff] }
   0x9   :  { %v27_v4 = vpack.c.bf16 %v23_v3, %v23_v3 }
   0xb   :  { %787 = vmatmul.mubr.msk.bf16.vlgmr.msra.gmra.mxu0 %vm16_vm0, %v27_v4 }
   0xc   :  { %799 = vmatpush3.bf16.msra.mxu0 %v941_v1  ;;  %802 = vmatprep.mubr.msk.bf16.mxu0 %vm918_vm1, %v917_v0 }
   0xd   :  { %800 = vmatprep.subr.bf16.mxu0 %v917_v0 }
  0x10   :  { %801 = vmatpush3.bf16.msra.mxu0 %v956_v2 }
  0x11   :  { %814 = vmatprep.subr.bf16.mxu0 %v917_v0 }
  0xcb   :  { %v78_v7 = vpop.f32.mrf.mxu0 }
  0xcc   :  { %v84_v8 = vadd.f32 %v78_v7, %v26_v6 }
  0xcd   :  { %v788_v9 = vpop.f32.mrf.mxu0 }
  0xce   :  { %853 = vtanh.f32 %v84_v8  ;;  %v713_v14 = vmul.f32 -1.442695, %v84_v8 }
  0xcf   :  { %v81_v10 = vpop.f32.mrf.mxu0 }
  0xd0   :  { %855 = vpow2.f32 %v713_v14 }
  0xd1   :  { %v789_v11 = vpop.f32.mrf.mxu0 }
  0xd2   :  { %v288_v11 = vunpack.c.h.bf16 %v720_v50 }
  0xdb   :  { %v854_v12 = vpop.eup %853 }
  0xdc   :  { %98 = vrot.lane.b32.xlu0 %v854_v12, %s919_s14 }
  0xdd   :  { %v856_v15 = vpop.eup %855 }
  0xde   :  { %v88_v16 = vadd.f32 1.0, %v856_v15 }
  0xe0   :  { %93 = vrot.lane.b32.xlu0 %v24_v13, %s919_s14  ;;  %857 = vrcp.f32 %v88_v16 }
  0xed   :  { %v858_v17 = vpop.eup %857 }
 0x14e   :  { %v99_v18 = vpop.permute.xlu0 %98 }
 0x14f   :  { %v101_v19 = vmul.f32 %v858_v17, %v99_v18 }
 0x151   :  { %103 = vrot.lane.b32.xlu1 %v101_v19, %s919_s14 }
 0x152   :  { %v94_v20 = vpop.permute.xlu0 %93 }
 0x153   :  { %v96_v21 = vmul.f32 %v858_v17, %v94_v20 }
 0x1c3   :  { %v104_v22 = vpop.permute.xlu1 %103 }
 0x1c4   :  { %v106_v23 = vadd.f32 %v104_v22, %v96_v21 }
 0x1c6   :  { %859 = vtanh.f32 %v106_v23 }
 0x1d3   :  { %v860_v24 = vpop.eup %859 }
 0x1d4   :  { %109 = vrot.lane.b32.xlu1 %v860_v24, %s919_s14 }
 0x246   :  { %v110_v25 = vpop.permute.xlu1 %109 }
 0x247   :  { %v112_v26 = vmul.f32 %v858_v17, %v110_v25 }
 0x249   :  { %v979_v27 = vpack.c.bf16 %v112_v26, %v112_v26 }
 0x24b   :  { %125 = vrot.lane.b32.xlu0 %v979_v27, %s920_s15 }
 0x2bd   :  { %v126_v28 = vpop.permute.xlu0 %125 }
 0x2be   :  { %795 = vmatmul.mubr.msk.bf16.vlgmr.msra.gmra.mxu1 %vm16_vm0, %v126_v28 }
 0x2bf   :  { %807 = vmatpush3.bf16.msra.mxu1 %v941_v1  ;;  %810 = vmatprep.mubr.msk.bf16.mxu1 %vm918_vm1, %v917_v0 }
 0x2c0   :  { %808 = vmatprep.subr.bf16.mxu1 %v917_v0 }
 0x2c3   :  { %809 = vmatpush3.bf16.msra.mxu1 %v956_v2 }
 0x2c4   :  { %822 = vmatprep.subr.bf16.mxu1 %v917_v0 }
 0x37e   :  { %v164_v30 = vpop.f32.mrf.mxu1 }
 0x37f   :  { %v170_v31 = vadd.f32 %v164_v30, %v124_v29 }
 0x380   :  { %v796_v32 = vpop.f32.mrf.mxu1 }
 0x381   :  { %861 = vtanh.f32 %v170_v31  ;;  %v717_v36 = vmul.f32 -1.442695, %v170_v31 }
 0x382   :  { %v167_v33 = vpop.f32.mrf.mxu1 }
 0x383   :  { %863 = vpow2.f32 %v717_v36  ;;  %v730_v33 = vld [vmem:[%s1119_s0 + $0x10] sm:$0xff]  }
 0x384   :  { %v797_v34 = vpop.f32.mrf.mxu1 }
 0x385   :  { %v370_v34 = vunpack.c.l.bf16 %v730_v33 }
 0x38e   :  { %v862_v35 = vpop.eup %861 }
 0x38f   :  { %180 = vrot.lane.b32.xlu1 %v862_v35, %s919_s14 }
 0x390   :  { %v864_v37 = vpop.eup %863 }
 0x391   :  { %v174_v38 = vadd.f32 1.0, %v864_v37 }
 0x393   :  { %865 = vrcp.f32 %v174_v38 }
 0x3a0   :  { %v866_v39 = vpop.eup %865 }
 0x3a1   :  { %v178_v42 = vmul.f32 %v866_v39, %v106_v23 }
 0x401   :  { %v181_v40 = vpop.permute.xlu1 %180 }
 0x402   :  { %v183_v41 = vmul.f32 %v866_v39, %v181_v40 }
 0x404   :  { %185 = vrot.lane.b32.xlu0 %v183_v41, %s919_s14 }
 0x476   :  { %v186_v43 = vpop.permute.xlu0 %185 }
 0x477   :  { %v188_v44 = vadd.f32 %v186_v43, %v178_v42 }
 0x479   :  { %867 = vtanh.f32 %v188_v44 }
 0x486   :  { %v868_v45 = vpop.eup %867 }
 0x487   :  { %191 = vrot.lane.b32.xlu1 %v868_v45, %s919_s14 }
 0x4f9   :  { %v192_v46 = vpop.permute.xlu1 %191 }
 0x4fa   :  { %v194_v47 = vmul.f32 %v866_v39, %v192_v46 }
 0x4fc   :  { %v993_v48 = vpack.c.bf16 %v194_v47, %v194_v47 }
 0x4fe   :  { %207 = vrot.lane.b32.xlu0 %v993_v48, %s920_s15 }
 0x570   :  { %v208_v49 = vpop.permute.xlu0 %207 }
 0x571   :  { %803 = vmatmul.mubr.msk.bf16.vlgmr.msra.gmra.mxu0 %vm16_vm0, %v208_v49 }
 0x572   :  { %815 = vmatpush3.bf16.msra.mxu0 %v941_v1  ;;  %818 = vmatprep.mubr.msk.bf16.mxu0 %vm918_vm1, %v917_v0 }
 0x573   :  { %816 = vmatprep.subr.bf16.mxu0 %v917_v0 }
 0x576   :  { %817 = vmatpush3.bf16.msra.mxu0 %v956_v2 }
 0x577   :  { %830 = vmatprep.subr.bf16.mxu0 %v917_v0 }
 0x631   :  { %v246_v52 = vpop.f32.mrf.mxu0 }
 0x632   :  { %v252_v53 = vadd.f32 %v246_v52, %v206_v51 }
 0x633   :  { %v804_v54 = vpop.f32.mrf.mxu0 }
 0x634   :  { %869 = vtanh.f32 %v252_v53  ;;  %v722_v58 = vmul.f32 -1.442695, %v252_v53 }
 0x635   :  { %v249_v55 = vpop.f32.mrf.mxu0 }
 0x636   :  { %871 = vpow2.f32 %v722_v58 }
 0x637   :  { %v805_v56 = vpop.f32.mrf.mxu0 }
 0x638   :  { %v452_v56 = vunpack.c.h.bf16 %v730_v33 }
 0x641   :  { %v870_v57 = vpop.eup %869 }
 0x642   :  { %262 = vrot.lane.b32.xlu1 %v870_v57, %s919_s14 }
 0x643   :  { %v872_v59 = vpop.eup %871 }
 0x644   :  { %v256_v60 = vadd.f32 1.0, %v872_v59 }
 0x646   :  { %873 = vrcp.f32 %v256_v60 }
 0x653   :  { %v874_v61 = vpop.eup %873 }
 0x654   :  { %v260_v3 = vmul.f32 %v874_v61, %v188_v44 }
 0x6b4   :  { %v263_v62 = vpop.permute.xlu1 %262 }
 0x6b5   :  { %v265_v63 = vmul.f32 %v874_v61, %v263_v62 }
 0x6b7   :  { %267 = vrot.lane.b32.xlu0 %v265_v63, %s919_s14 }
 0x729   :  { %v268_v4 = vpop.permute.xlu0 %267 }
 0x72a   :  { %v270_v5 = vadd.f32 %v268_v4, %v260_v3 }
 0x72c   :  { %875 = vtanh.f32 %v270_v5 }
 0x739   :  { %v876_v6 = vpop.eup %875 }
 0x73a   :  { %273 = vrot.lane.b32.xlu1 %v876_v6, %s919_s14 }
 0x7ac   :  { %v274_v7 = vpop.permute.xlu1 %273 }
 0x7ad   :  { %v276_v8 = vmul.f32 %v874_v61, %v274_v7 }
 0x7af   :  { %v1010_v9 = vpack.c.bf16 %v276_v8, %v276_v8 }
 0x7b1   :  { %289 = vrot.lane.b32.xlu0 %v1010_v9, %s920_s15 }
 0x823   :  { %v290_v10 = vpop.permute.xlu0 %289 }
 0x824   :  { %811 = vmatmul.mubr.msk.bf16.vlgmr.msra.gmra.mxu1 %vm16_vm0, %v290_v10 }
 0x825   :  { %823 = vmatpush3.bf16.msra.mxu1 %v941_v1  ;;  %826 = vmatprep.mubr.msk.bf16.mxu1 %vm918_vm1, %v917_v0 }
 0x826   :  { %824 = vmatprep.subr.bf16.mxu1 %v917_v0 }
 0x829   :  { %825 = vmatpush3.bf16.msra.mxu1 %v956_v2 }
 0x82a   :  { %838 = vmatprep.subr.bf16.mxu1 %v917_v0 }
 0x8e4   :  { %v328_v12 = vpop.f32.mrf.mxu1 }
 0x8e5   :  { %v334_v13 = vadd.f32 %v328_v12, %v288_v11 }
 0x8e6   :  { %v812_v14 = vpop.f32.mrf.mxu1 }
 0x8e7   :  { %877 = vtanh.f32 %v334_v13  ;;  %v727_v18 = vmul.f32 -1.442695, %v334_v13  ;;  %v740_v14 = vld [vmem:[%s1119_s0 + $0x18] sm:$0xff]  }
 0x8e8   :  { %v331_v15 = vpop.f32.mrf.mxu1 }
 0x8e9   :  { %879 = vpow2.f32 %v727_v18  ;;  %v534_v15 = vunpack.c.l.bf16 %v740_v14 }
 0x8ea   :  { %v813_v16 = vpop.f32.mrf.mxu1 }
 0x8f4   :  { %v878_v17 = vpop.eup %877 }
 0x8f5   :  { %344 = vrot.lane.b32.xlu1 %v878_v17, %s919_s14 }
 0x8f6   :  { %v880_v19 = vpop.eup %879 }
 0x8f7   :  { %v338_v20 = vadd.f32 1.0, %v880_v19 }
 0x8f9   :  { %881 = vrcp.f32 %v338_v20 }
 0x906   :  { %v882_v21 = vpop.eup %881 }
 0x907   :  { %v342_v24 = vmul.f32 %v882_v21, %v270_v5 }
 0x967   :  { %v345_v22 = vpop.permute.xlu1 %344 }
 0x968   :  { %v347_v23 = vmul.f32 %v882_v21, %v345_v22 }
 0x96a   :  { %349 = vrot.lane.b32.xlu0 %v347_v23, %s919_s14 }
 0x9dc   :  { %v350_v25 = vpop.permute.xlu0 %349 }
 0x9dd   :  { %v352_v26 = vadd.f32 %v350_v25, %v342_v24 }
 0x9df   :  { %883 = vtanh.f32 %v352_v26 }
 0x9ec   :  { %v884_v28 = vpop.eup %883 }
 0x9ed   :  { %355 = vrot.lane.b32.xlu1 %v884_v28, %s919_s14 }
 0xa5f   :  { %v356_v29 = vpop.permute.xlu1 %355 }
 0xa60   :  { %v358_v30 = vmul.f32 %v882_v21, %v356_v29 }
 0xa62   :  { %v1024_v31 = vpack.c.bf16 %v358_v30, %v358_v30 }
 0xa64   :  { %371 = vrot.lane.b32.xlu0 %v1024_v31, %s920_s15 }
 0xad6   :  { %v372_v32 = vpop.permute.xlu0 %371 }
 0xad7   :  { %819 = vmatmul.mubr.msk.bf16.vlgmr.msra.gmra.mxu0 %vm16_vm0, %v372_v32 }
 0xad8   :  { %831 = vmatpush3.bf16.msra.mxu0 %v941_v1  ;;  %834 = vmatprep.mubr.msk.bf16.mxu0 %vm918_vm1, %v917_v0 }
 0xad9   :  { %832 = vmatprep.subr.bf16.mxu0 %v917_v0 }
 0xadc   :  { %833 = vmatpush3.bf16.msra.mxu0 %v956_v2 }
 0xb97   :  { %v410_v35 = vpop.f32.mrf.mxu0 }
 0xb98   :  { %v416_v36 = vadd.f32 %v410_v35, %v370_v34 }
 0xb99   :  { %v820_v37 = vpop.f32.mrf.mxu0 }
 0xb9a   :  { %885 = vtanh.f32 %v416_v36  ;;  %v732_v41 = vmul.f32 -1.442695, %v416_v36 }
 0xb9b   :  { %v413_v38 = vpop.f32.mrf.mxu0 }
 0xb9c   :  { %887 = vpow2.f32 %v732_v41  ;;  %v616_v38 = vunpack.c.h.bf16 %v740_v14 }
 0xb9d   :  { %v821_v39 = vpop.f32.mrf.mxu0 }
 0xba7   :  { %v886_v40 = vpop.eup %885 }
 0xba8   :  { %426 = vrot.lane.b32.xlu1 %v886_v40, %s919_s14 }
 0xba9   :  { %v888_v42 = vpop.eup %887 }
 0xbaa   :  { %v420_v43 = vadd.f32 1.0, %v888_v42 }
 0xbac   :  { %889 = vrcp.f32 %v420_v43 }
 0xbb9   :  { %v890_v44 = vpop.eup %889 }
 0xbba   :  { %v424_v47 = vmul.f32 %v890_v44, %v352_v26 }
 0xc1a   :  { %v427_v45 = vpop.permute.xlu1 %426 }
 0xc1b   :  { %v429_v46 = vmul.f32 %v890_v44, %v427_v45 }
 0xc1d   :  { %431 = vrot.lane.b32.xlu0 %v429_v46, %s919_s14 }
 0xc8f   :  { %v432_v49 = vpop.permute.xlu0 %431 }
 0xc90   :  { %v434_v50 = vadd.f32 %v432_v49, %v424_v47 }
 0xc92   :  { %891 = vtanh.f32 %v434_v50 }
 0xc9f   :  { %v892_v51 = vpop.eup %891 }
 0xca0   :  { %437 = vrot.lane.b32.xlu1 %v892_v51, %s919_s14 }
 0xd12   :  { %v438_v52 = vpop.permute.xlu1 %437 }
 0xd13   :  { %v440_v53 = vmul.f32 %v890_v44, %v438_v52 }
 0xd15   :  { %v1040_v54 = vpack.c.bf16 %v440_v53, %v440_v53 }
 0xd17   :  { %453 = vrot.lane.b32.xlu0 %v1040_v54, %s920_s15 }
 0xd89   :  { %v454_v55 = vpop.permute.xlu0 %453 }
 0xd8a   :  { %827 = vmatmul.mubr.msk.bf16.vlgmr.msra.gmra.mxu1 %vm16_vm0, %v454_v55 }
 0xd8b   :  { %839 = vmatpush3.bf16.msra.mxu1 %v941_v1  ;;  %842 = vmatprep.mubr.msk.bf16.mxu1 %vm918_vm1, %v917_v0 }
 0xd8c   :  { %840 = vmatprep.subr.bf16.mxu1 %v917_v0 }
 0xd8f   :  { %841 = vmatpush3.bf16.msra.mxu1 %v956_v2 }
 0xe4a   :  { %v492_v57 = vpop.f32.mrf.mxu1 }
 0xe4b   :  { %v498_v58 = vadd.f32 %v492_v57, %v452_v56 }
 0xe4c   :  { %v828_v59 = vpop.f32.mrf.mxu1 }
 0xe4d   :  { %893 = vtanh.f32 %v498_v58  ;;  %v737_v63 = vmul.f32 -1.442695, %v498_v58 }
 0xe4e   :  { %v495_v60 = vpop.f32.mrf.mxu1 }
 0xe4f   :  { %895 = vpow2.f32 %v737_v63 }
 0xe50   :  { %v829_v61 = vpop.f32.mrf.mxu1 }
 0xe5a   :  { %v894_v62 = vpop.eup %893 }
 0xe5b   :  { %508 = vrot.lane.b32.xlu1 %v894_v62, %s919_s14 }
 0xe5c   :  { %v896_v1 = vpop.eup %895 }
 0xe5d   :  { %v502_v3 = vadd.f32 1.0, %v896_v1 }
 0xe5f   :  { %897 = vrcp.f32 %v502_v3 }
 0xe6c   :  { %v898_v4 = vpop.eup %897 }
 0xe6d   :  { %v506_v2 = vmul.f32 %v898_v4, %v434_v50 }
 0xecd   :  { %v509_v5 = vpop.permute.xlu1 %508 }
 0xece   :  { %v511_v0 = vmul.f32 %v898_v4, %v509_v5 }
 0xed0   :  { %513 = vrot.lane.b32.xlu0 %v511_v0, %s919_s14 }
 0xf42   :  { %v514_v6 = vpop.permute.xlu0 %513 }
 0xf43   :  { %v516_v7 = vadd.f32 %v514_v6, %v506_v2 }
 0xf45   :  { %899 = vtanh.f32 %v516_v7 }
 0xf52   :  { %v900_v8 = vpop.eup %899 }
 0xf53   :  { %519 = vrot.lane.b32.xlu1 %v900_v8, %s919_s14 }
 0xfc5   :  { %v520_v10 = vpop.permute.xlu1 %519 }
 0xfc6   :  { %v522_v11 = vmul.f32 %v898_v4, %v520_v10 }
 0xfc8   :  { %v1053_v12 = vpack.c.bf16 %v522_v11, %v522_v11 }
 0xfca   :  { %535 = vrot.lane.b32.xlu0 %v1053_v12, %s920_s15 }
0x103c   :  { %v536_v13 = vpop.permute.xlu0 %535 }
0x103d   :  { %835 = vmatmul.mubr.msk.bf16.vlgmr.msra.gmra.mxu0 %vm16_vm0, %v536_v13 }
0x10fd   :  { %v574_v16 = vpop.f32.mrf.mxu0 }
0x10fe   :  { %v580_v17 = vadd.f32 %v574_v16, %v534_v15 }
0x10ff   :  { %v836_v18 = vpop.f32.mrf.mxu0 }
0x1100   :  { %901 = vtanh.f32 %v580_v17  ;;  %v742_v22 = vmul.f32 -1.442695, %v580_v17 }
0x1101   :  { %v577_v19 = vpop.f32.mrf.mxu0 }
0x1102   :  { %903 = vpow2.f32 %v742_v22 }
0x1103   :  { %v837_v20 = vpop.f32.mrf.mxu0 }
0x110d   :  { %v902_v21 = vpop.eup %901 }
0x110e   :  { %590 = vrot.lane.b32.xlu1 %v902_v21, %s919_s14 }
0x110f   :  { %v904_v23 = vpop.eup %903 }
0x1110   :  { %v584_v24 = vadd.f32 1.0, %v904_v23 }
0x1112   :  { %905 = vrcp.f32 %v584_v24 }
0x111f   :  { %v906_v25 = vpop.eup %905 }
0x1120   :  { %v588_v29 = vmul.f32 %v906_v25, %v516_v7 }
0x1180   :  { %v591_v26 = vpop.permute.xlu1 %590 }
0x1181   :  { %v593_v28 = vmul.f32 %v906_v25, %v591_v26 }
0x1183   :  { %595 = vrot.lane.b32.xlu0 %v593_v28, %s919_s14 }
0x11f5   :  { %v596_v30 = vpop.permute.xlu0 %595 }
0x11f6   :  { %v598_v32 = vadd.f32 %v596_v30, %v588_v29 }
0x11f8   :  { %907 = vtanh.f32 %v598_v32 }
0x1205   :  { %v908_v33 = vpop.eup %907 }
0x1206   :  { %601 = vrot.lane.b32.xlu1 %v908_v33, %s919_s14 }
0x1278   :  { %v602_v34 = vpop.permute.xlu1 %601 }
0x1279   :  { %v604_v35 = vmul.f32 %v906_v25, %v602_v34 }
0x127b   :  { %v605_v36 = vpack.c.bf16 %v604_v35, %v604_v35 }
0x127d   :  { %617 = vrot.lane.b32.xlu0 %v605_v36, %s920_s15 }
0x12ef   :  { %v618_v37 = vpop.permute.xlu0 %617 }
0x12f0   :  { %843 = vmatmul.mubr.msk.bf16.vlgmr.msra.gmra.mxu1 %vm16_vm0, %v618_v37 }
0x13b0   :  { %v656_v39 = vpop.f32.mrf.mxu1 }
0x13b1   :  { %v662_v40 = vadd.f32 %v656_v39, %v616_v38 }
0x13b2   :  { %v844_v41 = vpop.f32.mrf.mxu1 }
0x13b3   :  { %909 = vtanh.f32 %v662_v40  ;;  %v747_v45 = vmul.f32 -1.442695, %v662_v40 }
0x13b4   :  { %v659_v42 = vpop.f32.mrf.mxu1 }
0x13b5   :  { %911 = vpow2.f32 %v747_v45 }
0x13b6   :  { %v845_v43 = vpop.f32.mrf.mxu1 }
0x13c0   :  { %v910_v44 = vpop.eup %909 }
0x13c1   :  { %672 = vrot.lane.b32.xlu1 %v910_v44, %s919_s14 }
0x13c2   :  { %v912_v46 = vpop.eup %911 }
0x13c3   :  { %v666_v47 = vadd.f32 1.0, %v912_v46 }
0x13c5   :  { %913 = vrcp.f32 %v666_v47 }
0x13d2   :  { %v914_v49 = vpop.eup %913 }
0x13d3   :  { %v670_v52 = vmul.f32 %v914_v49, %v598_v32 }
0x1433   :  { %v673_v50 = vpop.permute.xlu1 %672 }
0x1434   :  { %v675_v51 = vmul.f32 %v914_v49, %v673_v50 }
0x1436   :  { %677 = vrot.lane.b32.xlu0 %v675_v51, %s919_s14 }
0x143a   :  { %117 = vrot.lane.b32.xlu0 %v979_v27, %s920_s15 }
0x143e   :  { %281 = vrot.lane.b32.xlu0 %v1010_v9, %s920_s15 }
0x1442   :  { %445 = vrot.lane.b32.xlu0 %v1040_v54, %s920_s15 }
0x1446   :  { %609 = vrot.lane.b32.xlu0 %v605_v36, %s920_s15 }
0x14a8   :  { %v678_v53 = vpop.permute.xlu0 %677 }
0x14a9   :  { %v680_v55 = vadd.f32 %v678_v53, %v670_v52 }
0x14ab   :  { %915 = vtanh.f32 %v680_v55 }
0x14ac   :  { %v118_v56 = vpop.permute.xlu0 %117 }
0x14ad   :  { %121 = vst.msk [vmem:[%s1120_s2] sm:$0xf] %vm120_vm2, %v118_v56 }
0x14b0   :  { %v282_v27 = vpop.permute.xlu0 %281 }
0x14b1   :  { %724 = vst.msk [vmem:[%s1120_s2 + $0x8] sm:$0xf] %vm120_vm2, %v282_v27 }
0x14b4   :  { %v446_v9 = vpop.permute.xlu0 %445 }
0x14b5   :  { %734 = vst.msk [vmem:[%s1120_s2 + $0x10] sm:$0xf] %vm120_vm2, %v446_v9 }
0x14b8   :  { %v916_v54 = vpop.eup %915  ;;  %v610_v57 = vpop.permute.xlu0 %609 }
0x14b9   :  { %744 = vst.msk [vmem:[%s1120_s2 + $0x18] sm:$0xf] %vm120_vm2, %v610_v57  ;;  %683 = vrot.lane.b32.xlu1 %v916_v54, %s919_s14 }
0x14bd   :  { %199 = vrot.lane.b32.xlu1 %v993_v48, %s920_s15 }
0x14c1   :  { %363 = vrot.lane.b32.xlu1 %v1024_v31, %s920_s15 }
0x14c5   :  { %527 = vrot.lane.b32.xlu1 %v1053_v12, %s920_s15 }
0x152b   :  { %v684_v58 = vpop.permute.xlu1 %683 }
0x152c   :  { %v686_v59 = vmul.f32 %v914_v49, %v684_v58 }
0x152e   :  { %v757_v60 = vpack.c.bf16 %v686_v59, %v686_v59  ;;  %697 = vrot.lane.b32.xlu0 %v686_v59, %s920_s15 }
0x152f   :  { %v200_v61 = vpop.permute.xlu1 %199 }
0x1530   :  { %719 = vst.msk [vmem:[%s1120_s2 + $0x4] sm:$0xf] %vm120_vm2, %v200_v61  ;;  %691 = vrot.lane.b32.xlu1 %v757_v60, %s920_s15 }
0x1533   :  { %v364_v48 = vpop.permute.xlu1 %363 }
0x1534   :  { %729 = vst.msk [vmem:[%s1120_s2 + $0xc] sm:$0xf] %vm120_vm2, %v364_v48  ;;  %702 = vrot.lane.b32.xlu1 %v680_v55, %s921_s5 }
0x1537   :  { %v528_v31 = vpop.permute.xlu1 %527 }
0x1538   :  { %739 = vst.msk [vmem:[%s1120_s2 + $0x14] sm:$0xf] %vm120_vm2, %v528_v31 }
0x15a0   :  { %v698_v62 = vpop.permute.xlu0 %697 }
0x15a1   :  { %700 = vst.msk [vmem:[#allocation2] sm:$0xff] %vm16_vm0, %v698_v62 }
0x15a2   :  { %v692_v63 = vpop.permute.xlu1 %691 }
0x15a3   :  { %749 = vst.msk [vmem:[%s1120_s2 + $0x1c] sm:$0xf] %vm120_vm2, %v692_v63 }
0x15a6   :  { %v703_v1 = vpop.permute.xlu1 %702 }
0x15a7   :  { %705 = vst.msk [vmem:[#allocation3] sm:$0xff] %vm16_vm0, %v703_v1 }

// kernel: speaker_encoder_forward.7
= control target key start
LH: loop header
LB: loop body
LE: loop exit
PB: predicated region body
PF: predicated region fallthrough
CT: control target
= control target key end

     0   :  { %vm22_vm0 = vcmask 261120   ;;  %v944_v0 = vmov 0.0   ;;  %vm945_vm1 = vmmov 0   ;;  %s946_s20 = smov 32   ;;  %s947_s21 = smov 64   ;;  %vm729_vm2 = vcmask 130048   ;;  %s1109_s1 = inlined_call_operand.vmem [shape: bf16[32,128], index: 1, kind: input, shape index: {}]   ;;  %s1110_s0 = inlined_call_operand.vmem [shape: bf16[8,8,128], index: 0, kind: input, shape index: {}]   ;;  %s1111_s2 = inlined_call_operand.vmem [shape: bf16[32,16], index: 2, kind: input, shape index: {}]   ;;  %s1112_s3 = inlined_call_operand.vmem [shape: f32[1,16], index: 3, kind: input, shape index: {}]   ;;  %s1113_s4 = inlined_call_operand.vmem [shape: f32[8,16], index: 4, kind: output, shape index: {}]  }
   0x1   :  { %797 = vmatprep.subr.bf16.mxu0 %v944_v0  ;;  %v978_v1 = vld [vmem:[%s1109_s1 + $0x8] sm:$0xff]   ;;  %801 = vmatprep.mubr.msk.bf16.mxu0 %vm945_vm1, %v944_v0  ;;  %23 = vst.msk [vmem:[#allocation2] sm:$0xff] %vm22_vm0, %v944_v0  ;;  %24 = vst.msk [vmem:[#allocation3] sm:$0xff] %vm22_vm0, %v944_v0  ;;  %v993_v2 = vld [vmem:[%s1109_s1] sm:$0xff]   ;;  %s948_s5 = smov 96  }
   0x2   :  { %805 = vmatprep.subr.bf16.mxu1 %v944_v0  ;;  %809 = vmatprep.mubr.msk.bf16.mxu1 %vm945_vm1, %v944_v0  ;;  %v31_v5 = vld [vmem:[%s1110_s0] sm:$0xff]   ;;  %v748_v50 = vld [vmem:[%s1110_s0 + $0x8] sm:$0xff]  }
   0x3   :  { %798 = vmatpush3.bf16.msra.mxu0 %v978_v1  ;;  %806 = vmatpush3.bf16.msra.mxu1 %v978_v1  ;;  %v32_v6 = vunpack.c.l.bf16 %v31_v5  ;;  %v121_v29 = vunpack.c.h.bf16 %v31_v5  ;;  %v196_v51 = vunpack.c.l.bf16 %v748_v50 }
   0x4   :  { %799 = vmatprep.subr.bf16.mxu0 %v944_v0  ;;  %807 = vmatprep.subr.bf16.mxu1 %v944_v0 }
   0x7   :  { %800 = vmatpush3.bf16.msra.mxu0 %v993_v2  ;;  %808 = vmatpush3.bf16.msra.mxu1 %v993_v2 }
   0x8   :  { %v29_v3 = vld [vmem:[#allocation2] sm:$0xff]  ;;  %813 = vmatprep.subr.bf16.mxu0 %v944_v0  ;;  %821 = vmatprep.subr.bf16.mxu1 %v944_v0  ;;  %v30_v13 = vld [vmem:[#allocation3] sm:$0xff] }
   0x9   :  { %v33_v4 = vpack.c.bf16 %v29_v3, %v29_v3 }
   0xb   :  { %802 = vmatmul.mubr.msk.bf16.vlgmr.msra.gmra.mxu0 %vm22_vm0, %v33_v4 }
   0xc   :  { %814 = vmatpush3.bf16.msra.mxu0 %v978_v1  ;;  %817 = vmatprep.mubr.msk.bf16.mxu0 %vm945_vm1, %v944_v0 }
   0xd   :  { %815 = vmatprep.subr.bf16.mxu0 %v944_v0 }
  0x10   :  { %816 = vmatpush3.bf16.msra.mxu0 %v993_v2 }
  0x11   :  { %829 = vmatprep.subr.bf16.mxu0 %v944_v0 }
  0xcb   :  { %v84_v7 = vpop.f32.mrf.mxu0 }
  0xcc   :  { %v90_v8 = vadd.f32 %v84_v7, %v32_v6 }
  0xcd   :  { %v803_v9 = vpop.f32.mrf.mxu0 }
  0xce   :  { %878 = vtanh.f32 %v90_v8  ;;  %v744_v14 = vmul.f32 -1.442695, %v90_v8 }
  0xcf   :  { %v87_v10 = vpop.f32.mrf.mxu0 }
  0xd0   :  { %880 = vpow2.f32 %v744_v14 }
  0xd1   :  { %v804_v11 = vpop.f32.mrf.mxu0 }
  0xd2   :  { %v271_v11 = vunpack.c.h.bf16 %v748_v50 }
  0xdb   :  { %v879_v12 = vpop.eup %878 }
  0xdc   :  { %104 = vrot.lane.b32.xlu0 %v879_v12, %s946_s20 }
  0xdd   :  { %v881_v15 = vpop.eup %880 }
  0xde   :  { %v94_v16 = vadd.f32 1.0, %v881_v15 }
  0xe0   :  { %99 = vrot.lane.b32.xlu0 %v30_v13, %s946_s20  ;;  %882 = vrcp.f32 %v94_v16 }
  0xed   :  { %v883_v17 = vpop.eup %882 }
 0x14e   :  { %v105_v18 = vpop.permute.xlu0 %104 }
 0x14f   :  { %v107_v19 = vmul.f32 %v883_v17, %v105_v18 }
 0x151   :  { %109 = vrot.lane.b32.xlu1 %v107_v19, %s946_s20 }
 0x152   :  { %v100_v20 = vpop.permute.xlu0 %99 }
 0x153   :  { %v102_v21 = vmul.f32 %v883_v17, %v100_v20 }
 0x1c3   :  { %v110_v22 = vpop.permute.xlu1 %109 }
 0x1c4   :  { %v112_v23 = vadd.f32 %v110_v22, %v102_v21 }
 0x1c6   :  { %884 = vtanh.f32 %v112_v23 }
 0x1d3   :  { %v885_v24 = vpop.eup %884 }
 0x1d4   :  { %115 = vrot.lane.b32.xlu1 %v885_v24, %s946_s20 }
 0x246   :  { %v116_v25 = vpop.permute.xlu1 %115 }
 0x247   :  { %v118_v26 = vmul.f32 %v883_v17, %v116_v25 }
 0x249   :  { %v122_v27 = vpack.c.bf16 %v118_v26, %v118_v26 }
 0x24b   :  { %124 = vrot.lane.b32.xlu0 %v122_v27, %s947_s21 }
 0x2bd   :  { %v125_v28 = vpop.permute.xlu0 %124 }
 0x2be   :  { %810 = vmatmul.mubr.msk.bf16.vlgmr.msra.gmra.mxu1 %vm22_vm0, %v125_v28 }
 0x2bf   :  { %822 = vmatpush3.bf16.msra.mxu1 %v978_v1  ;;  %825 = vmatprep.mubr.msk.bf16.mxu1 %vm945_vm1, %v944_v0 }
 0x2c0   :  { %823 = vmatprep.subr.bf16.mxu1 %v944_v0 }
 0x2c3   :  { %824 = vmatpush3.bf16.msra.mxu1 %v993_v2 }
 0x2c4   :  { %837 = vmatprep.subr.bf16.mxu1 %v944_v0 }
 0x37e   :  { %v163_v30 = vpop.f32.mrf.mxu1 }
 0x37f   :  { %v169_v31 = vadd.f32 %v163_v30, %v121_v29 }
 0x380   :  { %v811_v32 = vpop.f32.mrf.mxu1 }
 0x381   :  { %886 = vtanh.f32 %v169_v31  ;;  %v747_v36 = vmul.f32 -1.442695, %v169_v31  ;;  %v754_v32 = vld [vmem:[%s1110_s0 + $0x10] sm:$0xff]  }
 0x382   :  { %v166_v33 = vpop.f32.mrf.mxu1 }
 0x383   :  { %888 = vpow2.f32 %v747_v36  ;;  %v346_v33 = vunpack.c.l.bf16 %v754_v32 }
 0x384   :  { %v812_v34 = vpop.f32.mrf.mxu1 }
 0x38e   :  { %v887_v35 = vpop.eup %886 }
 0x38f   :  { %179 = vrot.lane.b32.xlu1 %v887_v35, %s946_s20 }
 0x390   :  { %v889_v37 = vpop.eup %888 }
 0x391   :  { %v173_v38 = vadd.f32 1.0, %v889_v37 }
 0x393   :  { %890 = vrcp.f32 %v173_v38 }
 0x3a0   :  { %v891_v39 = vpop.eup %890 }
 0x3a1   :  { %v177_v42 = vmul.f32 %v891_v39, %v112_v23 }
 0x401   :  { %v180_v40 = vpop.permute.xlu1 %179 }
 0x402   :  { %v182_v41 = vmul.f32 %v891_v39, %v180_v40 }
 0x404   :  { %184 = vrot.lane.b32.xlu0 %v182_v41, %s946_s20 }
 0x476   :  { %v185_v43 = vpop.permute.xlu0 %184 }
 0x477   :  { %v187_v44 = vadd.f32 %v185_v43, %v177_v42 }
 0x479   :  { %892 = vtanh.f32 %v187_v44 }
 0x486   :  { %v893_v45 = vpop.eup %892 }
 0x487   :  { %190 = vrot.lane.b32.xlu1 %v893_v45, %s946_s20 }
 0x4f9   :  { %v191_v46 = vpop.permute.xlu1 %190 }
 0x4fa   :  { %v193_v47 = vmul.f32 %v891_v39, %v191_v46 }
 0x4fc   :  { %v197_v48 = vpack.c.bf16 %v193_v47, %v193_v47 }
 0x4fe   :  { %199 = vrot.lane.b32.xlu0 %v197_v48, %s947_s21 }
 0x570   :  { %v200_v49 = vpop.permute.xlu0 %199 }
 0x571   :  { %818 = vmatmul.mubr.msk.bf16.vlgmr.msra.gmra.mxu0 %vm22_vm0, %v200_v49 }
 0x572   :  { %830 = vmatpush3.bf16.msra.mxu0 %v978_v1  ;;  %833 = vmatprep.mubr.msk.bf16.mxu0 %vm945_vm1, %v944_v0 }
 0x573   :  { %831 = vmatprep.subr.bf16.mxu0 %v944_v0 }
 0x576   :  { %832 = vmatpush3.bf16.msra.mxu0 %v993_v2 }
 0x577   :  { %845 = vmatprep.subr.bf16.mxu0 %v944_v0 }
 0x631   :  { %v238_v52 = vpop.f32.mrf.mxu0 }
 0x632   :  { %v244_v53 = vadd.f32 %v238_v52, %v196_v51 }
 0x633   :  { %v819_v54 = vpop.f32.mrf.mxu0 }
 0x634   :  { %894 = vtanh.f32 %v244_v53  ;;  %v750_v58 = vmul.f32 -1.442695, %v244_v53  ;;  %v421_v54 = vunpack.c.h.bf16 %v754_v32 }
 0x635   :  { %v241_v55 = vpop.f32.mrf.mxu0 }
 0x636   :  { %896 = vpow2.f32 %v750_v58 }
 0x637   :  { %v820_v56 = vpop.f32.mrf.mxu0 }
 0x641   :  { %v895_v57 = vpop.eup %894 }
 0x642   :  { %254 = vrot.lane.b32.xlu1 %v895_v57, %s946_s20 }
 0x643   :  { %v897_v59 = vpop.eup %896 }
 0x644   :  { %v248_v60 = vadd.f32 1.0, %v897_v59 }
 0x646   :  { %898 = vrcp.f32 %v248_v60 }
 0x653   :  { %v899_v61 = vpop.eup %898 }
 0x654   :  { %v252_v3 = vmul.f32 %v899_v61, %v187_v44 }
 0x6b4   :  { %v255_v62 = vpop.permute.xlu1 %254 }
 0x6b5   :  { %v257_v63 = vmul.f32 %v899_v61, %v255_v62 }
 0x6b7   :  { %259 = vrot.lane.b32.xlu0 %v257_v63, %s946_s20 }
 0x729   :  { %v260_v4 = vpop.permute.xlu0 %259 }
 0x72a   :  { %v262_v5 = vadd.f32 %v260_v4, %v252_v3 }
 0x72c   :  { %900 = vtanh.f32 %v262_v5 }
 0x739   :  { %v901_v6 = vpop.eup %900 }
 0x73a   :  { %265 = vrot.lane.b32.xlu1 %v901_v6, %s946_s20 }
 0x7ac   :  { %v266_v7 = vpop.permute.xlu1 %265 }
 0x7ad   :  { %v268_v8 = vmul.f32 %v899_v61, %v266_v7 }
 0x7af   :  { %v272_v9 = vpack.c.bf16 %v268_v8, %v268_v8 }
 0x7b1   :  { %274 = vrot.lane.b32.xlu0 %v272_v9, %s947_s21 }
 0x823   :  { %v275_v10 = vpop.permute.xlu0 %274 }
 0x824   :  { %826 = vmatmul.mubr.msk.bf16.vlgmr.msra.gmra.mxu1 %vm22_vm0, %v275_v10 }
 0x825   :  { %838 = vmatpush3.bf16.msra.mxu1 %v978_v1  ;;  %841 = vmatprep.mubr.msk.bf16.mxu1 %vm945_vm1, %v944_v0 }
 0x826   :  { %839 = vmatprep.subr.bf16.mxu1 %v944_v0 }
 0x829   :  { %840 = vmatpush3.bf16.msra.mxu1 %v993_v2 }
 0x82a   :  { %853 = vmatprep.subr.bf16.mxu1 %v944_v0 }
 0x8e4   :  { %v313_v12 = vpop.f32.mrf.mxu1 }
 0x8e5   :  { %v319_v13 = vadd.f32 %v313_v12, %v271_v11  ;;  %v760_v12 = vld [vmem:[%s1110_s0 + $0x18] sm:$0xff]  }
 0x8e6   :  { %v827_v14 = vpop.f32.mrf.mxu1 }
 0x8e7   :  { %902 = vtanh.f32 %v319_v13  ;;  %v753_v18 = vmul.f32 -1.442695, %v319_v13  ;;  %v496_v13 = vunpack.c.l.bf16 %v760_v12 }
 0x8e8   :  { %v316_v15 = vpop.f32.mrf.mxu1 }
 0x8e9   :  { %904 = vpow2.f32 %v753_v18 }
 0x8ea   :  { %v828_v16 = vpop.f32.mrf.mxu1 }
 0x8f4   :  { %v903_v17 = vpop.eup %902 }
 0x8f5   :  { %329 = vrot.lane.b32.xlu1 %v903_v17, %s946_s20 }
 0x8f6   :  { %v905_v19 = vpop.eup %904 }
 0x8f7   :  { %v323_v20 = vadd.f32 1.0, %v905_v19 }
 0x8f9   :  { %906 = vrcp.f32 %v323_v20 }
 0x906   :  { %v907_v21 = vpop.eup %906 }
 0x907   :  { %v327_v24 = vmul.f32 %v907_v21, %v262_v5 }
 0x967   :  { %v330_v22 = vpop.permute.xlu1 %329 }
 0x968   :  { %v332_v23 = vmul.f32 %v907_v21, %v330_v22 }
 0x96a   :  { %334 = vrot.lane.b32.xlu0 %v332_v23, %s946_s20 }
 0x9dc   :  { %v335_v25 = vpop.permute.xlu0 %334 }
 0x9dd   :  { %v337_v26 = vadd.f32 %v335_v25, %v327_v24 }
 0x9df   :  { %908 = vtanh.f32 %v337_v26 }
 0x9ec   :  { %v909_v27 = vpop.eup %908 }
 0x9ed   :  { %340 = vrot.lane.b32.xlu1 %v909_v27, %s946_s20 }
 0xa5f   :  { %v341_v28 = vpop.permute.xlu1 %340 }
 0xa60   :  { %v343_v29 = vmul.f32 %v907_v21, %v341_v28 }
 0xa62   :  { %v347_v30 = vpack.c.bf16 %v343_v29, %v343_v29 }
 0xa64   :  { %349 = vrot.lane.b32.xlu0 %v347_v30, %s947_s21 }
 0xad6   :  { %v350_v31 = vpop.permute.xlu0 %349 }
 0xad7   :  { %834 = vmatmul.mubr.msk.bf16.vlgmr.msra.gmra.mxu0 %vm22_vm0, %v350_v31 }
 0xad8   :  { %846 = vmatpush3.bf16.msra.mxu0 %v978_v1  ;;  %849 = vmatprep.mubr.msk.bf16.mxu0 %vm945_vm1, %v944_v0 }
 0xad9   :  { %847 = vmatprep.subr.bf16.mxu0 %v944_v0 }
 0xadc   :  { %848 = vmatpush3.bf16.msra.mxu0 %v993_v2 }
 0xadd   :  { %861 = vmatprep.subr.bf16.mxu0 %v944_v0 }
 0xb97   :  { %v388_v34 = vpop.f32.mrf.mxu0 }
 0xb98   :  { %v394_v35 = vadd.f32 %v388_v34, %v346_v33  ;;  %v571_v34 = vunpack.c.h.bf16 %v760_v12 }
 0xb99   :  { %v835_v36 = vpop.f32.mrf.mxu0 }
 0xb9a   :  { %910 = vtanh.f32 %v394_v35  ;;  %v756_v40 = vmul.f32 -1.442695, %v394_v35 }
 0xb9b   :  { %v391_v37 = vpop.f32.mrf.mxu0 }
 0xb9c   :  { %912 = vpow2.f32 %v756_v40 }
 0xb9d   :  { %v836_v38 = vpop.f32.mrf.mxu0 }
 0xba7   :  { %v911_v39 = vpop.eup %910 }
 0xba8   :  { %404 = vrot.lane.b32.xlu1 %v911_v39, %s946_s20 }
 0xba9   :  { %v913_v41 = vpop.eup %912 }
 0xbaa   :  { %v398_v42 = vadd.f32 1.0, %v913_v41 }
 0xbac   :  { %914 = vrcp.f32 %v398_v42 }
 0xbb9   :  { %v915_v43 = vpop.eup %914 }
 0xbba   :  { %v402_v46 = vmul.f32 %v915_v43, %v337_v26 }
 0xc1a   :  { %v405_v44 = vpop.permute.xlu1 %404 }
 0xc1b   :  { %v407_v45 = vmul.f32 %v915_v43, %v405_v44 }
 0xc1d   :  { %409 = vrot.lane.b32.xlu0 %v407_v45, %s946_s20 }
 0xc8f   :  { %v410_v47 = vpop.permute.xlu0 %409 }
 0xc90   :  { %v412_v48 = vadd.f32 %v410_v47, %v402_v46 }
 0xc92   :  { %916 = vtanh.f32 %v412_v48 }
 0xc9f   :  { %v917_v49 = vpop.eup %916 }
 0xca0   :  { %415 = vrot.lane.b32.xlu1 %v917_v49, %s946_s20 }
 0xd12   :  { %v416_v50 = vpop.permute.xlu1 %415 }
 0xd13   :  { %v418_v51 = vmul.f32 %v915_v43, %v416_v50 }
 0xd15   :  { %v422_v52 = vpack.c.bf16 %v418_v51, %v418_v51  ;;  %v876_v51 = vld [vmem:[%s1111_s2 + $0x8] sm:$0xff]  }
 0xd17   :  { %424 = vrot.lane.b32.xlu0 %v422_v52, %s947_s21  ;;  %v877_v52 = vld [vmem:[%s1111_s2] sm:$0xff]  }
 0xd89   :  { %v425_v53 = vpop.permute.xlu0 %424 }
 0xd8a   :  { %842 = vmatmul.mubr.msk.bf16.vlgmr.msra.gmra.mxu1 %vm22_vm0, %v425_v53 }
 0xd8b   :  { %854 = vmatpush3.bf16.msra.mxu1 %v978_v1  ;;  %857 = vmatprep.mubr.msk.bf16.mxu1 %vm945_vm1, %v944_v0 }
 0xd8c   :  { %855 = vmatprep.subr.bf16.mxu1 %v944_v0 }
 0xd8f   :  { %856 = vmatpush3.bf16.msra.mxu1 %v993_v2 }
 0xe4a   :  { %v463_v55 = vpop.f32.mrf.mxu1 }
 0xe4b   :  { %v469_v56 = vadd.f32 %v463_v55, %v421_v54 }
 0xe4c   :  { %v843_v57 = vpop.f32.mrf.mxu1 }
 0xe4d   :  { %918 = vtanh.f32 %v469_v56  ;;  %v759_v61 = vmul.f32 -1.442695, %v469_v56 }
 0xe4e   :  { %v466_v58 = vpop.f32.mrf.mxu1 }
 0xe4f   :  { %920 = vpow2.f32 %v759_v61 }
 0xe50   :  { %v844_v59 = vpop.f32.mrf.mxu1 }
 0xe5a   :  { %v919_v60 = vpop.eup %918 }
 0xe5b   :  { %479 = vrot.lane.b32.xlu1 %v919_v60, %s946_s20 }
 0xe5c   :  { %v921_v1 = vpop.eup %920 }
 0xe5d   :  { %v473_v62 = vadd.f32 1.0, %v921_v1 }
 0xe5f   :  { %922 = vrcp.f32 %v473_v62 }
 0xe6c   :  { %v923_v63 = vpop.eup %922 }
 0xe6d   :  { %v477_v2 = vmul.f32 %v923_v63, %v412_v48 }
 0xecd   :  { %v480_v3 = vpop.permute.xlu1 %479 }
 0xece   :  { %v482_v4 = vmul.f32 %v923_v63, %v480_v3 }
 0xed0   :  { %484 = vrot.lane.b32.xlu0 %v482_v4, %s946_s20 }
 0xf42   :  { %v485_v5 = vpop.permute.xlu0 %484 }
 0xf43   :  { %v487_v6 = vadd.f32 %v485_v5, %v477_v2 }
 0xf45   :  { %924 = vtanh.f32 %v487_v6 }
 0xf52   :  { %v925_v7 = vpop.eup %924 }
 0xf53   :  { %490 = vrot.lane.b32.xlu1 %v925_v7, %s946_s20 }
 0xfc5   :  { %v491_v8 = vpop.permute.xlu1 %490 }
 0xfc6   :  { %v493_v9 = vmul.f32 %v923_v63, %v491_v8 }
 0xfc8   :  { %v497_v10 = vpack.c.bf16 %v493_v9, %v493_v9 }
 0xfca   :  { %499 = vrot.lane.b32.xlu0 %v497_v10, %s947_s21 }
0x103c   :  { %v500_v11 = vpop.permute.xlu0 %499 }
0x103d   :  { %850 = vmatmul.mubr.msk.bf16.vlgmr.msra.gmra.mxu0 %vm22_vm0, %v500_v11 }
0x103e   :  { %865 = vmatprep.mubr.msk.bf16.mxu0 %vm945_vm1, %v944_v0  ;;  %862 = vmatpush3.bf16.msra.mxu0 %v876_v51 }
0x103f   :  { %863 = vmatprep.subr.bf16.mxu0 %v944_v0  ;;  %v766_v0 = vld [vmem:[%s1112_s3] ss:$0 sm:$0xff] }
0x1042   :  { %864 = vmatpush3.bf16.msra.mxu0 %v877_v52 }
0x10fd   :  { %v538_v14 = vpop.f32.mrf.mxu0 }
0x10fe   :  { %v544_v15 = vadd.f32 %v538_v14, %v496_v13 }
0x10ff   :  { %v851_v16 = vpop.f32.mrf.mxu0 }
0x1100   :  { %926 = vtanh.f32 %v544_v15  ;;  %v762_v20 = vmul.f32 -1.442695, %v544_v15 }
0x1101   :  { %v541_v17 = vpop.f32.mrf.mxu0 }
0x1102   :  { %928 = vpow2.f32 %v762_v20 }
0x1103   :  { %v852_v18 = vpop.f32.mrf.mxu0 }
0x110d   :  { %v927_v19 = vpop.eup %926 }
0x110e   :  { %554 = vrot.lane.b32.xlu1 %v927_v19, %s946_s20 }
0x110f   :  { %v929_v21 = vpop.eup %928 }
0x1110   :  { %v548_v22 = vadd.f32 1.0, %v929_v21 }
0x1112   :  { %930 = vrcp.f32 %v548_v22 }
0x111f   :  { %v931_v23 = vpop.eup %930 }
0x1120   :  { %v552_v26 = vmul.f32 %v931_v23, %v487_v6 }
0x1180   :  { %v555_v24 = vpop.permute.xlu1 %554 }
0x1181   :  { %v557_v25 = vmul.f32 %v931_v23, %v555_v24 }
0x1183   :  { %559 = vrot.lane.b32.xlu0 %v557_v25, %s946_s20 }
0x11f5   :  { %v560_v27 = vpop.permute.xlu0 %559 }
0x11f6   :  { %v562_v28 = vadd.f32 %v560_v27, %v552_v26 }
0x11f8   :  { %932 = vtanh.f32 %v562_v28 }
0x1205   :  { %v933_v29 = vpop.eup %932 }
0x1206   :  { %565 = vrot.lane.b32.xlu1 %v933_v29, %s946_s20 }
0x1278   :  { %v566_v30 = vpop.permute.xlu1 %565 }
0x1279   :  { %v568_v31 = vmul.f32 %v931_v23, %v566_v30 }
0x127b   :  { %v572_v32 = vpack.c.bf16 %v568_v31, %v568_v31 }
0x127d   :  { %574 = vrot.lane.b32.xlu0 %v572_v32, %s947_s21 }
0x12ef   :  { %v575_v33 = vpop.permute.xlu0 %574 }
0x12f0   :  { %858 = vmatmul.mubr.msk.bf16.vlgmr.msra.gmra.mxu1 %vm22_vm0, %v575_v33 }
0x13b0   :  { %v613_v35 = vpop.f32.mrf.mxu1 }
0x13b1   :  { %v619_v36 = vadd.f32 %v613_v35, %v571_v34 }
0x13b2   :  { %v859_v37 = vpop.f32.mrf.mxu1 }
0x13b3   :  { %934 = vtanh.f32 %v619_v36  ;;  %v765_v41 = vmul.f32 -1.442695, %v619_v36 }
0x13b4   :  { %v616_v38 = vpop.f32.mrf.mxu1 }
0x13b5   :  { %936 = vpow2.f32 %v765_v41 }
0x13b6   :  { %v860_v39 = vpop.f32.mrf.mxu1 }
0x13c0   :  { %v935_v40 = vpop.eup %934 }
0x13c1   :  { %629 = vrot.lane.b32.xlu1 %v935_v40, %s946_s20 }
0x13c2   :  { %v937_v42 = vpop.eup %936 }
0x13c3   :  { %v623_v43 = vadd.f32 1.0, %v937_v42 }
0x13c5   :  { %938 = vrcp.f32 %v623_v43 }
0x13d2   :  { %v939_v44 = vpop.eup %938 }
0x13d3   :  { %v627_v47 = vmul.f32 %v939_v44, %v562_v28 }
0x1433   :  { %v630_v45 = vpop.permute.xlu1 %629 }
0x1434   :  { %v632_v46 = vmul.f32 %v939_v44, %v630_v45 }
0x1436   :  { %634 = vrot.lane.b32.xlu0 %v632_v46, %s946_s20 }
0x14a8   :  { %v635_v48 = vpop.permute.xlu0 %634 }
0x14a9   :  { %v637_v49 = vadd.f32 %v635_v48, %v627_v47 }
0x14ab   :  { %940 = vtanh.f32 %v637_v49 }
0x14b8   :  { %v941_v50 = vpop.eup %940 }
0x14b9   :  { %640 = vrot.lane.b32.xlu1 %v941_v50, %s946_s20 }
0x152b   :  { %v641_v53 = vpop.permute.xlu1 %640 }
0x152c   :  { %v643_v54 = vmul.f32 %v939_v44, %v641_v53 }
0x152e   :  { %v657_v55 = vpack.c.bf16 %v643_v54, %v643_v54 }
0x1530   :  { %670 = vrot.lane.b32.xlu0 %v657_v55, %s947_s21 }
0x1534   :  { %645 = vrot.lane.b32.xlu0 %v643_v54, %s947_s21 }
0x1538   :  { %650 = vrot.lane.b32.xlu0 %v637_v49, %s948_s5 }
0x15a2   :  { %v671_v56 = vpop.permute.xlu0 %670 }
0x15a3   :  { %866 = vmatmul.mubr.msk.bf16.vlgmr.msra.gmra.mxu0 %vm22_vm0, %v671_v56 }
0x15a6   :  { %v646_v57 = vpop.permute.xlu0 %645 }
0x15a7   :  { %648 = vst.msk [vmem:[#allocation2] sm:$0xff] %vm22_vm0, %v646_v57 }
0x15aa   :  { %v651_v58 = vpop.permute.xlu0 %650 }
0x15ab   :  { %653 = vst.msk [vmem:[#allocation3] sm:$0xff] %vm22_vm0, %v651_v58 }
0x1663   :  { %v721_v59 = vpop.f32.mrf.mxu0 }
0x1664   :  { %v722_v60 = vadd.f32 %v766_v0, %v721_v59 }
0x1665   :  { %v867_v61 = vpop.f32.mrf.mxu0 }
0x1666   :  { %v727_v1 = vmax.f32 %v722_v60, 0.0 }
0x1667   :  { %v724_v62 = vpop.f32.mrf.mxu0 }
0x1668   :  { %v728_v63 = vmul.f32 %v727_v1, %v727_v1 }
0x1669   :  { %v868_v3 = vpop.f32.mrf.mxu0 }
0x166a   :  { %v730_v4 = vsel %vm729_vm2, %v728_v63, 0.0 }
0x166b   :  { %731 = vadd.xlane.f32.xlu1 %v730_v4 }
0x16f4   :  { %v732_v2 = vpop.xlane.xlu1 %731 }
0x16f5   :  { %v733_v5 = vadd.f32 1e-12, %v732_v2 }
0x16f7   :  { %942 = vrsqrt.f32 %v733_v5 }
0x1704   :  { %v943_v6 = vpop.eup %942 }
0x1705   :  { %v735_v7 = vmul.f32 %v943_v6, %v727_v1 }
0x1707   :  { %736 = vst.msk [vmem:[%s1113_s4] sm:$0xff] %vm729_vm2, %v735_v7 }

</bundles_post_ra>
